<compile_context>
chip_gen: v7x
topology: tpu7x:2x2x1
jax: 0.10.0
libtpu: 0.0.40
codegen_flags: <defaults>
</compile_context>

<pallas_src>
import math

import jax
import jax.numpy as jnp
from jax.experimental import pallas as pl
from jax.experimental.pallas import tpu as pltpu


LATENT_DIMS = 3
HIDDEN_DIMS = (64, 256)
OUTPUT_DIMS = 4


def _round_up(x, m):
    return ((x + m - 1) // m) * m


def _layer1_dtype():
    """bf16 for the VPU layer only on chips with packed-bf16 VALUs (v6e/v7x)."""
    try:
        kind = jax.devices()[0].device_kind.lower()
    except Exception:
        return jnp.float32
    if "v6" in kind or "v7" in kind or "7x" in kind:
        return jnp.bfloat16
    return jnp.float32


def _choose_tiling(B, batch_tile):
    """Lane-aligned batch tile with an even number of >= 2 grid steps
    whenever the 128-padded batch is >= 256 (keeps v7x's two TCs balanced)."""
    batch_tile = max(128, (batch_tile // 128) * 128)
    b128 = _round_up(max(B, 1), 128)
    if b128 < 256:
        return 128, 128, 1
    bt = min(batch_tile, _round_up(pl.cdiv(b128, 2), 128))
    steps = pl.cdiv(b128, bt)
    if steps % 2:
        steps += 1
    bt = _round_up(pl.cdiv(b128, steps), 128)   # <= batch_tile by construction
    return bt, steps * bt, steps


def _mlp_kernel(z_ref, w1_ref, b1_ref, w2_ref, b2_ref, w3_ref, b3_ref, o_ref):
    # z_ref : (L, bt)  layer-1 dtype (f32 on v5e, bf16 on v6e/v7x); batch on lanes
    # w1_ref: (H0, L), b1_ref: (H0, 1)  layer-1 dtype (VPU layer)
    # w2_ref: (H1, H0) bf16, b2_ref: (H1, 1) f32
    # w3_ref: (O, H1)  bf16, b3_ref: (O, 1)  f32
    z = z_ref[...]
    w1 = w1_ref[...]
    L = z.shape[0]  # static (= 3)

    # Layer 1 on the VPU: K=3 contraction as broadcast outer-product FMAs
    # (avoids a ~1%-utilized MXU pass; VALU slots are otherwise idle here).
    acc = w1[:, 0:1] * z[0:1, :]
    for k in range(1, L):
        acc = acc + w1[:, k:k + 1] * z[k:k + 1, :]
    h1 = jnp.maximum(acc + b1_ref[...], 0.0).astype(jnp.bfloat16)     # (H0, bt)

    # Layer 2 on the MXU (bf16 operands, f32 accumulation). Epilogue + bf16
    # cast fused in one expression so only the bf16 h2 buffer is materialized.
    h2 = jnp.dot(w2_ref[...], h1, preferred_element_type=jnp.float32)
    h2 = jnp.maximum(h2 + b2_ref[...], 0.0).astype(jnp.bfloat16)      # (H1, bt)

    # Layer 3 on the MXU, no activation.
    out = jnp.dot(w3_ref[...], h2, preferred_element_type=jnp.float32)  # (O, bt)
    o_ref[...] = (out + b3_ref[...]).astype(o_ref.dtype)


def spe10_decoder_forward(z, params, *, batch_tile=4096, feature_major=False):
    """Fused decoder MLP on TPU via Pallas.

    z:      (B, 3) float32  -- or (3, B) if feature_major=True
    params: PyTorch-native layouts:
            w1 (64,3), b1 (64,1), w2 (256,64), b2 (256,1), w3 (4,256), b3 (4,1)
    Returns (B, 4) float32 -- or (4, B) if feature_major=True.
    """
    w1, b1 = params["w1"], params["b1"]
    w2, b2 = params["w2"], params["b2"]
    w3, b3 = params["w3"], params["b3"]
    H0, H1, O = w1.shape[0], w2.shape[0], w3.shape[0]

    if feature_major:
        L, B = z.shape
    else:
        B, L = z.shape
    assert L == LATENT_DIMS

    l1_dt = _layer1_dtype()
    bt, B_pad, steps = _choose_tiling(B, batch_tile)

    # Feature-major, lane-dense staging: batch on the lane axis. One fused
    # pad(+cast)+transpose instead of zeros + dynamic-update-slice + transpose.
    if feature_major:
        z_t = jnp.pad(z.astype(l1_dt), ((0, 0), (0, B_pad - B)))
    else:
        z_t = jnp.pad(z.astype(l1_dt), ((0, B_pad - B), (0, 0))).T

    w1c, b1c = w1.astype(l1_dt), b1.astype(l1_dt)
    w2c, b2c = w2.astype(jnp.bfloat16), b2.astype(jnp.float32)
    w3c, b3c = w3.astype(jnp.bfloat16), b3.astype(jnp.float32)

    itm = jnp.dtype(l1_dt).itemsize
    flops = 2 * B_pad * (L * H0 + H0 * H1 + H1 * O)
    bytes_accessed = (L * B_pad * itm + (H0 * L + H0) * itm
                      + (H1 * H0 + O * H1) * 2 + (H1 + O) * 4
                      + O * B_pad * 4)

    def build(single_buffer_weights):
        if single_buffer_weights:
            # Grid-invariant blocks: single-buffer them (no re-DMA, less VMEM).
            wspec = lambda shape: pl.BlockSpec(
                shape, lambda i: (0, 0), pipeline_mode=pl.Buffered(1))
        else:
            wspec = lambda shape: pl.BlockSpec(shape, lambda i: (0, 0))
        return pl.pallas_call(
            _mlp_kernel,
            out_shape=jax.ShapeDtypeStruct((O, B_pad), jnp.float32),
            grid_spec=pltpu.PrefetchScalarGridSpec(
                num_scalar_prefetch=0,
                grid=(steps,),
                in_specs=[
                    pl.BlockSpec((L, bt), lambda i: (0, i)),   # lane-dense z tile
                    wspec((H0, L)), wspec((H0, 1)),            # layer 1 (VPU)
                    wspec((H1, H0)), wspec((H1, 1)),           # layer 2 (MXU)
                    wspec((O, H1)), wspec((O, 1)),             # layer 3 (MXU)
                ],
                out_specs=pl.BlockSpec((O, bt), lambda i: (0, i)),
            ),
            compiler_params=pltpu.CompilerParams(
                dimension_semantics=("parallel",),
                vmem_limit_bytes=32 * 1024 * 1024,
            ),
            cost_estimate=pl.CostEstimate(
                flops=flops, transcendentals=0, bytes_accessed=bytes_accessed),
        )

    args = (z_t, w1c, b1c, w2c, b2c, w3c, b3c)
    try:
        out_t = build(True)(*args)
    except Exception:
        # pipeline_mode=pl.Buffered(1) not supported on this jax/libtpu stack:
        # fall back to default double-buffering for the tiny weight blocks.
        out_t = build(False)(*args)

    if feature_major:
        return out_t[:, :B]
    # Drop batch padding, return batch-major (B, O) like the PyTorch module.
    return out_t[:, :B].T


def init_params(key):
    """PyTorch nn.Linear default init (U[-1/sqrt(fan_in), +1/sqrt(fan_in)]).

    Weights kept in PyTorch-native (out_features, in_features); biases (out, 1).
    """
    layer_dims = [LATENT_DIMS, *HIDDEN_DIMS, OUTPUT_DIMS]
    params = {}
    for idx in range(len(layer_dims) - 1):
        fan_in, fan_out = layer_dims[idx], layer_dims[idx + 1]
        key, kw, kb = jax.random.split(key, 3)
        bound = 1.0 / math.sqrt(fan_in)
        params[f"w{idx + 1}"] = jax.random.uniform(
            kw, (fan_out, fan_in), jnp.float32, -bound, bound)
        params[f"b{idx + 1}"] = jax.random.uniform(
            kb, (fan_out, 1), jnp.float32, -bound, bound)
    return params


def reference_forward(z, params):
    """Pure-JAX f32 reference matching the PyTorch module."""
    h = jnp.maximum(z @ params["w1"].T + params["b1"].T, 0.0)
    h = jnp.maximum(h @ params["w2"].T + params["b2"].T, 0.0)
    return h @ params["w3"].T + params["b3"].T


if __name__ == "__main__":
    key = jax.random.PRNGKey(0)
    key, kz = jax.random.split(key)

    # Small, deliberately non-tile-aligned batch: exercises pad + a 2-step grid.
    batch = 200
    z = jax.random.normal(kz, (batch, LATENT_DIMS), jnp.float32)
    params = init_params(key)

    out = spe10_decoder_forward(z, params)
    out = jax.block_until_ready(out)

    ref = reference_forward(z, params)
    assert out.shape == (batch, OUTPUT_DIMS)
    # bf16 operands on all three layers on v6e/v7x (f32 MXU accumulation) ->
    # loosened tolerance vs. the f32 reference.
    assert jnp.allclose(out, ref, atol=3e-2, rtol=3e-2), "mismatch vs JAX reference"

    print("KERNEL_OK")
</pallas_src>

<mosaic_0001>
module attributes {stable_mosaic.version = 11 : i64} {
  func.func @_mlp_kernel(%arg0: i32, %arg1: memref<3x128xf32, #tpu.memory_space<vmem>>, %arg2: memref<64x3xf32, #tpu.memory_space<vmem>>, %arg3: memref<64x1xf32, #tpu.memory_space<vmem>>, %arg4: memref<256x64xbf16, #tpu.memory_space<vmem>>, %arg5: memref<256x1xf32, #tpu.memory_space<vmem>>, %arg6: memref<4x256xbf16, #tpu.memory_space<vmem>>, %arg7: memref<4x1xf32, #tpu.memory_space<vmem>>, %arg8: memref<4x128xf32, #tpu.memory_space<vmem>>) attributes {dimension_semantics = [#tpu.dimension_semantics<parallel>], iteration_bounds = array<i64: 2>, scalar_prefetch = 0 : i64, scratch_operands = 0 : i64, tpu.core_type = #tpu.core_type<tc>, window_params = [{transform_indices = @transform_0, window_bounds = array<i64: 3, 128>}, {pipeline_mode = #tpu.pipeline_mode<synchronous>, transform_indices = @transform_1, window_bounds = array<i64: 64, 3>}, {pipeline_mode = #tpu.pipeline_mode<synchronous>, transform_indices = @transform_2, window_bounds = array<i64: 64, 1>}, {pipeline_mode = #tpu.pipeline_mode<synchronous>, transform_indices = @transform_3, window_bounds = array<i64: 256, 64>}, {pipeline_mode = #tpu.pipeline_mode<synchronous>, transform_indices = @transform_4, window_bounds = array<i64: 256, 1>}, {pipeline_mode = #tpu.pipeline_mode<synchronous>, transform_indices = @transform_5, window_bounds = array<i64: 4, 256>}, {pipeline_mode = #tpu.pipeline_mode<synchronous>, transform_indices = @transform_6, window_bounds = array<i64: 4, 1>}, {transform_indices = @transform_7, window_bounds = array<i64: 4, 128>}]} {
    %c0 = arith.constant 0 : index
    %c0_0 = arith.constant 0 : index
    %0 = vector.load %arg1[%c0, %c0_0] : memref<3x128xf32, #tpu.memory_space<vmem>>, vector<3x128xf32>
    %c0_1 = arith.constant 0 : index
    %c0_2 = arith.constant 0 : index
    %1 = vector.load %arg2[%c0_1, %c0_2] : memref<64x3xf32, #tpu.memory_space<vmem>>, vector<64x3xf32>
    %2 = vector.extract_strided_slice %1 {offsets = [0, 0], sizes = [64, 1], strides = [1, 1]} : vector<64x3xf32> to vector<64x1xf32>
    %3 = vector.extract_strided_slice %0 {offsets = [0, 0], sizes = [1, 128], strides = [1, 1]} : vector<3x128xf32> to vector<1x128xf32>
    %4 = vector.broadcast %2 : vector<64x1xf32> to vector<64x128xf32>
    %5 = vector.broadcast %3 : vector<1x128xf32> to vector<64x128xf32>
    %6 = arith.mulf %4, %5 : vector<64x128xf32>
    %7 = vector.extract_strided_slice %1 {offsets = [0, 1], sizes = [64, 1], strides = [1, 1]} : vector<64x3xf32> to vector<64x1xf32>
    %8 = vector.extract_strided_slice %0 {offsets = [1, 0], sizes = [1, 128], strides = [1, 1]} : vector<3x128xf32> to vector<1x128xf32>
    %9 = vector.broadcast %7 : vector<64x1xf32> to vector<64x128xf32>
    %10 = vector.broadcast %8 : vector<1x128xf32> to vector<64x128xf32>
    %11 = arith.mulf %9, %10 : vector<64x128xf32>
    %12 = arith.addf %6, %11 : vector<64x128xf32>
    %13 = vector.extract_strided_slice %1 {offsets = [0, 2], sizes = [64, 1], strides = [1, 1]} : vector<64x3xf32> to vector<64x1xf32>
    %14 = vector.extract_strided_slice %0 {offsets = [2, 0], sizes = [1, 128], strides = [1, 1]} : vector<3x128xf32> to vector<1x128xf32>
    %15 = vector.broadcast %13 : vector<64x1xf32> to vector<64x128xf32>
    %16 = vector.broadcast %14 : vector<1x128xf32> to vector<64x128xf32>
    %17 = arith.mulf %15, %16 : vector<64x128xf32>
    %18 = arith.addf %12, %17 : vector<64x128xf32>
    %c0_3 = arith.constant 0 : index
    %c0_4 = arith.constant 0 : index
    %19 = vector.load %arg3[%c0_3, %c0_4] : memref<64x1xf32, #tpu.memory_space<vmem>>, vector<64x1xf32>
    %20 = vector.broadcast %19 : vector<64x1xf32> to vector<64x128xf32>
    %21 = arith.addf %18, %20 : vector<64x128xf32>
    %cst = arith.constant 0.000000e+00 : f32
    %22 = vector.broadcast %cst : f32 to vector<64x128xf32>
    %23 = arith.maximumf %21, %22 : vector<64x128xf32>
    %24 = arith.truncf %23 : vector<64x128xf32> to vector<64x128xbf16>
    %c0_5 = arith.constant 0 : index
    %c0_6 = arith.constant 0 : index
    %25 = vector.load %arg4[%c0_5, %c0_6] : memref<256x64xbf16, #tpu.memory_space<vmem>>, vector<256x64xbf16>
    %cst_7 = arith.constant dense<0.000000e+00> : vector<256x128xf32>
    %26 = tpu.matmul %25, %24, %cst_7 {dimension_numbers = #tpu.dot_dimension_numbers<[1], [0], [0], [1], [0, 0, 1, 1], [], []>} : vector<256x64xbf16>, vector<64x128xbf16>, vector<256x128xf32> -> vector<256x128xf32>
    %c0_8 = arith.constant 0 : index
    %c0_9 = arith.constant 0 : index
    %27 = vector.load %arg5[%c0_8, %c0_9] : memref<256x1xf32, #tpu.memory_space<vmem>>, vector<256x1xf32>
    %28 = vector.broadcast %27 : vector<256x1xf32> to vector<256x128xf32>
    %29 = arith.addf %26, %28 : vector<256x128xf32>
    %cst_10 = arith.constant 0.000000e+00 : f32
    %30 = vector.broadcast %cst_10 : f32 to vector<256x128xf32>
    %31 = arith.maximumf %29, %30 : vector<256x128xf32>
    %32 = arith.truncf %31 : vector<256x128xf32> to vector<256x128xbf16>
    %c0_11 = arith.constant 0 : index
    %c0_12 = arith.constant 0 : index
    %33 = vector.load %arg6[%c0_11, %c0_12] : memref<4x256xbf16, #tpu.memory_space<vmem>>, vector<4x256xbf16>
    %cst_13 = arith.constant dense<0.000000e+00> : vector<4x128xf32>
    %34 = tpu.matmul %33, %32, %cst_13 {dimension_numbers = #tpu.dot_dimension_numbers<[1], [0], [0], [1], [0, 0, 1, 1], [], []>} : vector<4x256xbf16>, vector<256x128xbf16>, vector<4x128xf32> -> vector<4x128xf32>
    %c0_14 = arith.constant 0 : index
    %c0_15 = arith.constant 0 : index
    %35 = vector.load %arg7[%c0_14, %c0_15] : memref<4x1xf32, #tpu.memory_space<vmem>>, vector<4x1xf32>
    %36 = vector.broadcast %35 : vector<4x1xf32> to vector<4x128xf32>
    %37 = arith.addf %34, %36 : vector<4x128xf32>
    %c0_16 = arith.constant 0 : index
    %c0_17 = arith.constant 0 : index
    %38 = vector.load %arg8[%c0_16, %c0_17] : memref<4x128xf32, #tpu.memory_space<vmem>>, vector<4x128xf32>
    tpu.vector_store %arg8[%c0_16, %c0_17], %37 {strides = array<i32>} : memref<4x128xf32, #tpu.memory_space<vmem>>, vector<4x128xf32>,
    return
  }
  func.func @transform_0(%arg0: i32) -> (i32, i32) {
    %c0_i32 = arith.constant 0 : i32
    %c0_i32_0 = arith.constant 0 : i32
    return %c0_i32, %arg0 : i32, i32
  }
  func.func @transform_1(%arg0: i32) -> (i32, i32) {
    %c0_i32 = arith.constant 0 : i32
    %c0_i32_0 = arith.constant 0 : i32
    %c0_i32_1 = arith.constant 0 : i32
    return %c0_i32, %c0_i32_0 : i32, i32
  }
  func.func @transform_2(%arg0: i32) -> (i32, i32) {
    %c0_i32 = arith.constant 0 : i32
    %c0_i32_0 = arith.constant 0 : i32
    %c0_i32_1 = arith.constant 0 : i32
    return %c0_i32, %c0_i32_0 : i32, i32
  }
  func.func @transform_3(%arg0: i32) -> (i32, i32) {
    %c0_i32 = arith.constant 0 : i32
    %c0_i32_0 = arith.constant 0 : i32
    %c0_i32_1 = arith.constant 0 : i32
    return %c0_i32, %c0_i32_0 : i32, i32
  }
  func.func @transform_4(%arg0: i32) -> (i32, i32) {
    %c0_i32 = arith.constant 0 : i32
    %c0_i32_0 = arith.constant 0 : i32
    %c0_i32_1 = arith.constant 0 : i32
    return %c0_i32, %c0_i32_0 : i32, i32
  }
  func.func @transform_5(%arg0: i32) -> (i32, i32) {
    %c0_i32 = arith.constant 0 : i32
    %c0_i32_0 = arith.constant 0 : i32
    %c0_i32_1 = arith.constant 0 : i32
    return %c0_i32, %c0_i32_0 : i32, i32
  }
  func.func @transform_6(%arg0: i32) -> (i32, i32) {
    %c0_i32 = arith.constant 0 : i32
    %c0_i32_0 = arith.constant 0 : i32
    %c0_i32_1 = arith.constant 0 : i32
    return %c0_i32, %c0_i32_0 : i32, i32
  }
  func.func @transform_7(%arg0: i32) -> (i32, i32) {
    %c0_i32 = arith.constant 0 : i32
    %c0_i32_0 = arith.constant 0 : i32
    return %c0_i32, %arg0 : i32, i32
  }
}

module attributes {stable_mosaic.version = 11 : i64} {
  func.func @_mlp_kernel(%arg0: i32, %arg1: memref<3x128xf32, #tpu.memory_space<vmem>>, %arg2: memref<64x3xf32, #tpu.memory_space<vmem>>, %arg3: memref<64x1xf32, #tpu.memory_space<vmem>>, %arg4: memref<256x64xbf16, #tpu.memory_space<vmem>>, %arg5: memref<256x1xf32, #tpu.memory_space<vmem>>, %arg6: memref<4x256xbf16, #tpu.memory_space<vmem>>, %arg7: memref<4x1xf32, #tpu.memory_space<vmem>>, %arg8: memref<4x128xf32, #tpu.memory_space<vmem>>) attributes {dimension_semantics = [#tpu.dimension_semantics<parallel>], iteration_bounds = array<i64: 2>, scalar_prefetch = 0 : i64, scratch_operands = 0 : i64, tpu.core_type = #tpu.core_type<tc>, window_params = [{transform_indices = @transform_0, window_bounds = array<i64: 3, 128>}, {pipeline_mode = #tpu.pipeline_mode<synchronous>, transform_indices = @transform_1, window_bounds = array<i64: 64, 3>}, {pipeline_mode = #tpu.pipeline_mode<synchronous>, transform_indices = @transform_2, window_bounds = array<i64: 64, 1>}, {pipeline_mode = #tpu.pipeline_mode<synchronous>, transform_indices = @transform_3, window_bounds = array<i64: 256, 64>}, {pipeline_mode = #tpu.pipeline_mode<synchronous>, transform_indices = @transform_4, window_bounds = array<i64: 256, 1>}, {pipeline_mode = #tpu.pipeline_mode<synchronous>, transform_indices = @transform_5, window_bounds = array<i64: 4, 256>}, {pipeline_mode = #tpu.pipeline_mode<synchronous>, transform_indices = @transform_6, window_bounds = array<i64: 4, 1>}, {transform_indices = @transform_7, window_bounds = array<i64: 4, 128>}]} {
    %c0 = arith.constant 0 : index
    %c0_0 = arith.constant 0 : index
    %0 = vector.load %arg1[%c0, %c0_0] : memref<3x128xf32, #tpu.memory_space<vmem>>, vector<3x128xf32>
    %c0_1 = arith.constant 0 : index
    %c0_2 = arith.constant 0 : index
    %1 = vector.load %arg2[%c0_1, %c0_2] : memref<64x3xf32, #tpu.memory_space<vmem>>, vector<64x3xf32>
    %2 = vector.extract_strided_slice %1 {offsets = [0, 0], sizes = [64, 1], strides = [1, 1]} : vector<64x3xf32> to vector<64x1xf32>
    %3 = vector.extract_strided_slice %0 {offsets = [0, 0], sizes = [1, 128], strides = [1, 1]} : vector<3x128xf32> to vector<1x128xf32>
    %4 = vector.broadcast %2 : vector<64x1xf32> to vector<64x128xf32>
    %5 = vector.broadcast %3 : vector<1x128xf32> to vector<64x128xf32>
    %6 = arith.mulf %4, %5 : vector<64x128xf32>
    %7 = vector.extract_strided_slice %1 {offsets = [0, 1], sizes = [64, 1], strides = [1, 1]} : vector<64x3xf32> to vector<64x1xf32>
    %8 = vector.extract_strided_slice %0 {offsets = [1, 0], sizes = [1, 128], strides = [1, 1]} : vector<3x128xf32> to vector<1x128xf32>
    %9 = vector.broadcast %7 : vector<64x1xf32> to vector<64x128xf32>
    %10 = vector.broadcast %8 : vector<1x128xf32> to vector<64x128xf32>
    %11 = arith.mulf %9, %10 : vector<64x128xf32>
    %12 = arith.addf %6, %11 : vector<64x128xf32>
    %13 = vector.extract_strided_slice %1 {offsets = [0, 2], sizes = [64, 1], strides = [1, 1]} : vector<64x3xf32> to vector<64x1xf32>
    %14 = vector.extract_strided_slice %0 {offsets = [2, 0], sizes = [1, 128], strides = [1, 1]} : vector<3x128xf32> to vector<1x128xf32>
    %15 = vector.broadcast %13 : vector<64x1xf32> to vector<64x128xf32>
    %16 = vector.broadcast %14 : vector<1x128xf32> to vector<64x128xf32>
    %17 = arith.mulf %15, %16 : vector<64x128xf32>
    %18 = arith.addf %12, %17 : vector<64x128xf32>
    %c0_3 = arith.constant 0 : index
    %c0_4 = arith.constant 0 : index
    %19 = vector.load %arg3[%c0_3, %c0_4] : memref<64x1xf32, #tpu.memory_space<vmem>>, vector<64x1xf32>
    %20 = vector.broadcast %19 : vector<64x1xf32> to vector<64x128xf32>
    %21 = arith.addf %18, %20 : vector<64x128xf32>
    %cst = arith.constant 0.000000e+00 : f32
    %22 = vector.broadcast %cst : f32 to vector<64x128xf32>
    %23 = arith.maximumf %21, %22 : vector<64x128xf32>
    %24 = arith.truncf %23 : vector<64x128xf32> to vector<64x128xbf16>
    %c0_5 = arith.constant 0 : index
    %c0_6 = arith.constant 0 : index
    %25 = vector.load %arg4[%c0_5, %c0_6] : memref<256x64xbf16, #tpu.memory_space<vmem>>, vector<256x64xbf16>
    %cst_7 = arith.constant dense<0.000000e+00> : vector<256x128xf32>
    %26 = tpu.matmul %25, %24, %cst_7 {dimension_numbers = #tpu.dot_dimension_numbers<[1], [0], [0], [1], [0, 0, 1, 1], [], []>} : vector<256x64xbf16>, vector<64x128xbf16>, vector<256x128xf32> -> vector<256x128xf32>
    %c0_8 = arith.constant 0 : index
    %c0_9 = arith.constant 0 : index
    %27 = vector.load %arg5[%c0_8, %c0_9] : memref<256x1xf32, #tpu.memory_space<vmem>>, vector<256x1xf32>
    %28 = vector.broadcast %27 : vector<256x1xf32> to vector<256x128xf32>
    %29 = arith.addf %26, %28 : vector<256x128xf32>
    %cst_10 = arith.constant 0.000000e+00 : f32
    %30 = vector.broadcast %cst_10 : f32 to vector<256x128xf32>
    %31 = arith.maximumf %29, %30 : vector<256x128xf32>
    %32 = arith.truncf %31 : vector<256x128xf32> to vector<256x128xbf16>
    %c0_11 = arith.constant 0 : index
    %c0_12 = arith.constant 0 : index
    %33 = vector.load %arg6[%c0_11, %c0_12] : memref<4x256xbf16, #tpu.memory_space<vmem>>, vector<4x256xbf16>
    %cst_13 = arith.constant dense<0.000000e+00> : vector<4x128xf32>
    %34 = tpu.matmul %33, %32, %cst_13 {dimension_numbers = #tpu.dot_dimension_numbers<[1], [0], [0], [1], [0, 0, 1, 1], [], []>} : vector<4x256xbf16>, vector<256x128xbf16>, vector<4x128xf32> -> vector<4x128xf32>
    %c0_14 = arith.constant 0 : index
    %c0_15 = arith.constant 0 : index
    %35 = vector.load %arg7[%c0_14, %c0_15] : memref<4x1xf32, #tpu.memory_space<vmem>>, vector<4x1xf32>
    %36 = vector.broadcast %35 : vector<4x1xf32> to vector<4x128xf32>
    %37 = arith.addf %34, %36 : vector<4x128xf32>
    %c0_16 = arith.constant 0 : index
    %c0_17 = arith.constant 0 : index
    %38 = vector.load %arg8[%c0_16, %c0_17] : memref<4x128xf32, #tpu.memory_space<vmem>>, vector<4x128xf32>
    tpu.vector_store %arg8[%c0_16, %c0_17], %37 {strides = array<i32>} : memref<4x128xf32, #tpu.memory_space<vmem>>, vector<4x128xf32>,
    return
  }
  func.func @transform_0(%arg0: i32) -> (i32, i32) {
    %c0_i32 = arith.constant 0 : i32
    %c0_i32_0 = arith.constant 0 : i32
    return %c0_i32, %arg0 : i32, i32
  }
  func.func @transform_1(%arg0: i32) -> (i32, i32) {
    %c0_i32 = arith.constant 0 : i32
    %c0_i32_0 = arith.constant 0 : i32
    %c0_i32_1 = arith.constant 0 : i32
    return %c0_i32, %c0_i32_0 : i32, i32
  }
  func.func @transform_2(%arg0: i32) -> (i32, i32) {
    %c0_i32 = arith.constant 0 : i32
    %c0_i32_0 = arith.constant 0 : i32
    %c0_i32_1 = arith.constant 0 : i32
    return %c0_i32, %c0_i32_0 : i32, i32
  }
  func.func @transform_3(%arg0: i32) -> (i32, i32) {
    %c0_i32 = arith.constant 0 : i32
    %c0_i32_0 = arith.constant 0 : i32
    %c0_i32_1 = arith.constant 0 : i32
    return %c0_i32, %c0_i32_0 : i32, i32
  }
  func.func @transform_4(%arg0: i32) -> (i32, i32) {
    %c0_i32 = arith.constant 0 : i32
    %c0_i32_0 = arith.constant 0 : i32
    %c0_i32_1 = arith.constant 0 : i32
    return %c0_i32, %c0_i32_0 : i32, i32
  }
  func.func @transform_5(%arg0: i32) -> (i32, i32) {
    %c0_i32 = arith.constant 0 : i32
    %c0_i32_0 = arith.constant 0 : i32
    %c0_i32_1 = arith.constant 0 : i32
    return %c0_i32, %c0_i32_0 : i32, i32
  }
  func.func @transform_6(%arg0: i32) -> (i32, i32) {
    %c0_i32 = arith.constant 0 : i32
    %c0_i32_0 = arith.constant 0 : i32
    %c0_i32_1 = arith.constant 0 : i32
    return %c0_i32, %c0_i32_0 : i32, i32
  }
  func.func @transform_7(%arg0: i32) -> (i32, i32) {
    %c0_i32 = arith.constant 0 : i32
    %c0_i32_0 = arith.constant 0 : i32
    return %c0_i32, %arg0 : i32, i32
  }
}

</mosaic_0001>

<bundles_post_ra>
// kernel: tpu_custom_call.1
= control target key start
LH: loop header
LB: loop body
LE: loop exit
PB: predicated region body
PF: predicated region fallthrough
CT: control target
= control target key end

     0   :  { %12 = vsyncpa [#allocation3], 0  ;;  %s1951_s0 = inlined_call_operand.vmem [shape: f32[3,256], index: 0, kind: input, shape index: {}]   ;;  %s1952_s1 = inlined_call_operand.vmem [shape: f32[64,3], index: 1, kind: input, shape index: {}]   ;;  %s1953_s2 = inlined_call_operand.vmem [shape: f32[64,1], index: 2, kind: input, shape index: {}]   ;;  %s1954_s3 = inlined_call_operand.vmem [shape: bf16[256,64], index: 3, kind: input, shape index: {}]   ;;  %s1955_s4 = inlined_call_operand.vmem [shape: f32[256,1], index: 4, kind: input, shape index: {}]   ;;  %s1956_s5 = inlined_call_operand.vmem [shape: bf16[4,256], index: 5, kind: input, shape index: {}]   ;;  %s1957_s6 = inlined_call_operand.vmem [shape: f32[4,1], index: 6, kind: input, shape index: {}]   ;;  %s1958_s7 = inlined_call_operand.hbm [shape: f32[4,256], index: 7, kind: output, shape index: {}]  }
   0x1   :  { %14 = vsyncpa [#allocation3 + $0x1], 0  ;;  %s1508_s24 = smov 0   ;;  %s1510_s25 = smov 0  }
   0x2   :  { %s1512_s26 = smov 0   ;;  %s1514_s27 = smov 0  }
   0x3 LB: > { %s1529_s28 = sadd.s32 4294967295, %s1462_s27   ;;  %s1202_s29 = sadd.s32 4294967294, %s1462_s27   ;;  %s1462_s27 = sphi %s1514_s27, %s1964_s27   ;;  %s1458_s26 = sphi %s1512_s26, %s1963_s26   ;;  %s1454_s25 = sphi %s1510_s25, %s1962_s25   ;;  %s1450_s24 = sphi %s1508_s24, %s1961_s24  }
   0x4   : > { %s1533_s30 = sadd.s32 1, %s1462_s27   ;;  %s179_s8 = sadd.s32 1, %s1458_s26 }
   0x5   : > { %s176_s9 = ssub.s32 %s1462_s27, %s1533_s30  ;;  %p189_p0 = scmp.ne.s32.totalorder %s1458_s26, %s1454_s25 }
   0x6   : > { %p177_p1 = scmp.eq.s32.totalorder %s176_s9, 0  ;;  %p190_p2 = scmp.eq.s32.totalorder %s1529_s28, 1 }
   0x7   : > { %p195_p3 = scmp.ne.s32.totalorder %s1454_s25, %s1450_s24  ;;  %p196_p4 = scmp.eq.s32.totalorder %s1202_s29, 1 }
   0x8   : > { %s1544_s10 = scalar_select %p177_p1, %s1458_s26, %s179_s8  }
   0x9   : > { %p1546_p5 = por %p190_p2, %p189_p0  ;;  %p1550_p6 = por %p196_p4, %p195_p3 }
   0xa   : > { %p1205_p7 = scmp.ge.s32.totalorder %s1462_s27, 1  ;;  %p239_p8 = scmp.lt.s32.totalorder %s1462_s27, 3 }
   0xc   : > { %p240_p9 = pnand %p1205_p7, %p239_p8 }
   0xd   : > { %v276_v0 = vld [vmem:[%s1952_s1] sm:$0xff] (!%p240_p9)  ;;  %v1464_v1 = vmov (!%p240_p9), 2   ;;  %v1465_v2 = vmov (!%p240_p9), 1   ;;  %v278_v3 = vld [vmem:[%s1952_s1 + $0x10] sm:$0xff] (!%p240_p9)  ;;  %v277_v4 = vld [vmem:[%s1952_s1 + $0x8] sm:$0xff] (!%p240_p9)  ;;  %v1466_v7 = vmov (!%p240_p9), 0   ;;  %v324_v55 = vlaneseq (!%p240_p9) }
   0xe   : > { %243 = sbr.rel (%p240_p9) target bundleno = 756 (0x2f4), region = 48  ;;  %1370 = vset.pattern.permute.xlu0 (!%p240_p9), %v1464_v1  ;;  %1369 = vset.pattern.permute.xlu1 (!%p240_p9), %v1465_v2  ;;  %v281_v5 = vld [vmem:[%s1952_s1 + $0x28] sm:$0xff] (!%p240_p9)  ;;  %v280_v6 = vld [vmem:[%s1952_s1 + $0x20] sm:$0xff] (!%p240_p9)  ;;  %v283_v8 = vld [vmem:[%s1952_s1 + $0x38] sm:$0xff] (!%p240_p9)  ;;  %vm812_vm0 = vcmask (!%p240_p9), 523264   ;;  %p270_p10 = scmp.lt.s32.totalorder (!%p240_p9), %s1529_s28, 1 }
   0xf   : > { %389 = vperm.xlu0 (!%p240_p9), %1370, %v276_v0   ;;  %337 = vperm.xlu1 (!%p240_p9), %1369, %v276_v0   ;;  %v279_v9 = vld [vmem:[%s1952_s1 + $0x18] sm:$0xff] (!%p240_p9)  ;;  %v440_v10 = vld [vmem:[%s1953_s2] sm:$0xff] (!%p240_p9)  ;;  %v441_v11 = vld [vmem:[%s1953_s2 + $0x8] sm:$0xff] (!%p240_p9)  ;;  %v325_v58 = vshrl.u32 (!%p240_p9), %v324_v55, 7  ;;  %s267_s29 = sand.u32 (!%p240_p9), 1, %s1454_s25   ;;  %s1242_s9 = sshll.u32 (!%p240_p9), %s1529_s28, 6 }
  0x10   : > { %v282_v12 = vld [vmem:[%s1952_s1 + $0x30] sm:$0xff] (!%p240_p9)  ;;  %v444_v13 = vld [vmem:[%s1953_s2 + $0x20] sm:$0xff] (!%p240_p9)  ;;  %v447_v14 = vld [vmem:[%s1953_s2 + $0x38] sm:$0xff] (!%p240_p9)  ;;  %s1206_s8 = sshll.u32 (!%p240_p9), %s267_s29, 2  ;;  %s1909_s17 = scalar_lea.hbm (!%p240_p9), %s1958_s7, %s1242_s9 }
  0x11   : > { %v557_v15 = vld [vmem:[%s1955_s4 + $0x88] sm:$0xff] (!%p240_p9)  ;;  %v442_v17 = vld [vmem:[%s1953_s2 + $0x10] sm:$0xff] (!%p240_p9)  ;;  %v559_v18 = vld [vmem:[%s1955_s4 + $0x98] sm:$0xff] (!%p240_p9)  ;;  %v370_v62 = vsub.s32 (!%p240_p9), 1, %v325_v58  ;;  %v326_v63 = vsub.s32 (!%p240_p9), 0, %v325_v58  ;;  %s1130_s18 = scalar_lea.sflag (!%p240_p9), [#allocation3], %s267_s29 }
  0x12   : > { %v541_v16 = vld [vmem:[%s1955_s4 + $0x8] sm:$0xff] (!%p240_p9)  ;;  %v443_v19 = vld [vmem:[%s1953_s2 + $0x18] sm:$0xff] (!%p240_p9)  ;;  %v446_v28 = vld [vmem:[%s1953_s2 + $0x30] sm:$0xff] (!%p240_p9) }
  0x13   : > { %397 = vperm.xlu0 (!%p240_p9), %1370, %v278_v3   ;;  %341 = vperm.xlu1 (!%p240_p9), %1369, %v277_v4   ;;  %v543_v20 = vld [vmem:[%s1955_s4 + $0x18] sm:$0xff] (!%p240_p9)  ;;  %v561_v21 = vld [vmem:[%s1955_s4 + $0xa8] sm:$0xff] (!%p240_p9)  ;;  %v556_v30 = vld [vmem:[%s1955_s4 + $0x80] sm:$0xff] (!%p240_p9) }
  0x14   : > { %v545_v22 = vld [vmem:[%s1955_s4 + $0x28] sm:$0xff] (!%p240_p9)  ;;  %v563_v23 = vld [vmem:[%s1955_s4 + $0xb8] sm:$0xff] (!%p240_p9)  ;;  %v540_v32 = vld [vmem:[%s1955_s4] sm:$0xff] (!%p240_p9) }
  0x15   : > { %v547_v24 = vld [vmem:[%s1955_s4 + $0x38] sm:$0xff]  ;;  %v565_v25 = vld [vmem:[%s1955_s4 + $0xc8] sm:$0xff]  ;;  %v1384_v33 = vld [vmem:[%s1954_s3] sm:$0xff]   ;;  %s271_s19 = scalar_select %p270_p10, %s1529_s28, 1 }
  0x16   : > { %v445_v26 = vld [vmem:[%s1953_s2 + $0x28] sm:$0xff]  ;;  %v567_v29 = vld [vmem:[%s1955_s4 + $0xd8] sm:$0xff]  ;;  %v558_v35 = vld [vmem:[%s1955_s4 + $0x90] sm:$0xff]  ;;  %1295 = vmatprep.mubr.msk.bf16.mxu0 %vm812_vm0, %v1384_v33 }
  0x17   : > { %409 = vperm.xlu0 %1370, %v281_v5   ;;  %1371 = vset.pattern.permute.xlu1 %v1464_v1  ;;  %v549_v27 = vld [vmem:[%s1955_s4 + $0x48] sm:$0xff]  ;;  %v551_v31 = vld [vmem:[%s1955_s4 + $0x58] sm:$0xff]  ;;  %v542_v37 = vld [vmem:[%s1955_s4 + $0x10] sm:$0xff]  ;;  %s1207_s22 = sshll.u32 %s271_s19, 2  ;;  %s1467_s19 = smov [#allocation2]  }
  0x18   : > { %393 = vperm.xlu1 %1371, %v277_v4   ;;  %v569_v34 = vld [vmem:[%s1955_s4 + $0xe8] sm:$0xff]  ;;  %v571_v38 = vld [vmem:[%s1955_s4 + $0xf8] sm:$0xff]  ;;  %v560_v39 = vld [vmem:[%s1955_s4 + $0xa0] sm:$0xff]  ;;  %s273_s13 = scalar_lea.vmem %s1951_s0, %s1207_s22  ;;  %s1404_s20 = sshll.u32 %s1467_s19, 4  ;;  %s1405_s20 = int_to_ptr.vmem [resolvable:$false] %s1404_s20 }
  0x19   : > { %v553_v36 = vld [vmem:[%s1955_s4 + $0x68] sm:$0xff]  ;;  %v555_v40 = vld [vmem:[%s1955_s4 + $0x78] sm:$0xff]  ;;  %v544_v41 = vld [vmem:[%s1955_s4 + $0x20] sm:$0xff]  ;;  %s1406_s21 = scalar_lea.vmem %s1405_s20, 128 }
  0x1a   : > { %v562_v42 = vld [vmem:[%s1955_s4 + $0xb0] sm:$0xff]  ;;  %v564_v44 = vld [vmem:[%s1955_s4 + $0xc0] sm:$0xff] }
  0x1b   : > { %1378 = vset.pattern.permute.xlu0 %v1465_v2  ;;  %v546_v43 = vld [vmem:[%s1955_s4 + $0x30] sm:$0xff]  ;;  %v548_v45 = vld [vmem:[%s1955_s4 + $0x40] sm:$0xff] }
  0x1c   : > { %353 = vperm.xlu0 %1378, %v280_v6   ;;  %1372 = vset.pattern.permute.xlu1 %v1466_v7  ;;  %v566_v48 = vld [vmem:[%s1955_s4 + $0xd0] sm:$0xff]  ;;  %v568_v54 = vld [vmem:[%s1955_s4 + $0xe0] sm:$0xff] }
  0x1d   : > { %296 = vperm.xlu1 %1372, %v278_v3   ;;  %v550_v51 = vld [vmem:[%s1955_s4 + $0x50] sm:$0xff]  ;;  %v552_v57 = vld [vmem:[%s1955_s4 + $0x60] sm:$0xff] }
  0x1e   : > { %v570_v61 = vld [vmem:[%s1955_s4 + $0xf0] sm:$0xff] }
  0x20   : > { %365 = vperm.xlu0 %1378, %v283_v8  }
  0x21   : > { %1373 = vset.pattern.permute.xlu1 %v1465_v2 }
  0x22   : > { %345 = vperm.xlu1 %1373, %v278_v3  }
  0x24   : > { %1381 = vset.pattern.permute.xlu0 %v1466_v7 }
  0x25   : > { %286 = vperm.xlu0 %1381, %v276_v0   ;;  %v275_v0 = vld [vmem:[%s273_s13] sm:$0x7]  ;;  %s269_s13 = scalar_lea.vmem [#allocation2], %s1206_s8 }
  0x26   : > { %349 = vperm.xlu1 %1373, %v279_v9   ;;  %v1727_v3 = vrot.slane %v275_v0, %v370_v62  ;;  %s1143_s14 = sshll.u32 %s269_s13, 4  ;;  %s1911_s14 = int_to_ptr.vmem [resolvable:$true] %s1143_s14 }
  0x27   : > { %s1400_s28 = scalar_lea.vmem %s1911_s14, 64  ;;  %p1407_p0 = scmp.lt.s32.totalorder %s1911_s14, %s1405_s20 }
  0x28   : > { %p1401_p11 = scmp.ne.s32.totalorder %s1911_s14, %s1400_s28  ;;  %p1408_p1 = scmp.lt.s32.totalorder %s1406_s21, %s1400_s28 }
  0x29   : > { %291 = vperm.xlu0 %1381, %v277_v4   ;;  %v422_v4 = vsub.s32 2, %v325_v58 }
  0x2a   : > { %1374 = vset.pattern.permute.xlu1 %v1464_v1  ;;  %p1402_p12 = pnand %p1401_p11, %p1546_p5  ;;  %p1409_p2 = por %p1408_p1, %p1407_p0 }
  0x2b   : > { %401 = vperm.xlu1 %1374, %v279_v9  }
  0x2c   : > { %p1403_p13 = pneg %p1402_p12 }
  0x2d   : > { %301 = vperm.xlu0 %1381, %v279_v9   ;;  %v1071_v9 = vld [vmem:[%s1957_s6] sm:$0xf] }
  0x2e   : > { %p1410_p3 = pnand %p1409_p2, %p1403_p13 }
  0x2f   : > { %1375 = vset.pattern.permute.xlu1 %v1466_v7 }
  0x30   : > { %450 = vperm.xlu1 %1375, %v440_v10  }
  0x31   : > { %455 = vperm.xlu0 %1381, %v441_v11   ;;  %v1736_v11 = vrot.slane %v275_v0, %v422_v4 }
  0x34   : > { %306 = vperm.xlu1 %1375, %v280_v6  }
  0x35   : > { %316 = vperm.xlu0 %1381, %v282_v12  }
  0x38   : > { %311 = vperm.xlu1 %1375, %v281_v5  }
  0x39   : > { %470 = vperm.xlu0 %1381, %v444_v13  }
  0x3c   : > { %1376 = vset.pattern.permute.xlu1 %v1465_v2 }
  0x3d   : > { %485 = vperm.xlu0 %1381, %v447_v14   ;;  %357 = vperm.xlu1 %1376, %v281_v5   ;;  %v1729_v5 = vrot.slane %v275_v0, %v326_v63 }
  0x41   : > { %659 = vperm.xlu0 %1381, %v557_v15   ;;  %1377 = vset.pattern.permute.xlu1 %v1464_v1 }
  0x42   : > { %405 = vperm.xlu1 %1377, %v280_v6  }
  0x45   : > { %579 = vperm.xlu0 %1381, %v541_v16  }
  0x46   : > { %1379 = vset.pattern.permute.xlu1 %v1466_v7 }
  0x47   : > { %460 = vperm.xlu1 %1379, %v442_v17  }
  0x49   : > { %669 = vperm.xlu0 %1381, %v559_v18  }
  0x4b   : > { %465 = vperm.xlu1 %1379, %v443_v19  }
  0x4d   : > { %589 = vperm.xlu0 %1381, %v543_v20  }
  0x4f   : > { %321 = vperm.xlu1 %1379, %v283_v8  }
  0x51   : > { %679 = vperm.xlu0 %1381, %v561_v21  }
  0x53   : > { %1380 = vset.pattern.permute.xlu1 %v1465_v2  ;;  %v554_v2 = vld [vmem:[%s1955_s4 + $0x70] sm:$0xff] }
  0x54   : > { %361 = vperm.xlu1 %1380, %v282_v12  }
  0x55   : > { %599 = vperm.xlu0 %1381, %v545_v22  }
  0x58   : > { %1382 = vset.pattern.permute.xlu1 %v1464_v1 }
  0x59   : > { %689 = vperm.xlu0 %1381, %v563_v23   ;;  %413 = vperm.xlu1 %1382, %v282_v12  }
  0x5d   : > { %609 = vperm.xlu0 %1381, %v547_v24   ;;  %417 = vperm.xlu1 %1382, %v283_v8  }
  0x61   : > { %699 = vperm.xlu0 %1381, %v565_v25   ;;  %1383 = vset.pattern.permute.xlu1 %v1466_v7 }
  0x62   : > { %475 = vperm.xlu1 %1383, %v445_v26  }
  0x65   : > { %619 = vperm.xlu0 %1381, %v549_v27  }
  0x66   : > { %480 = vperm.xlu1 %1383, %v446_v28  }
  0x69   : > { %709 = vperm.xlu0 %1381, %v567_v29  }
  0x6a   : > { %654 = vperm.xlu1 %1383, %v556_v30  }
  0x6d   : > { %629 = vperm.xlu0 %1381, %v551_v31  }
  0x6e   : > { %574 = vperm.xlu1 %1383, %v540_v32  }
  0x71   : > { %719 = vperm.xlu0 %1381, %v569_v34  }
  0x72   : > { %664 = vperm.xlu1 %1383, %v558_v35  }
  0x75   : > { %639 = vperm.xlu0 %1381, %v553_v36  }
  0x76   : > { %584 = vperm.xlu1 %1383, %v542_v37  }
  0x79   : > { %729 = vperm.xlu0 %1381, %v571_v38  }
  0x7a   : > { %674 = vperm.xlu1 %1383, %v560_v39  }
  0x7d   : > { %649 = vperm.xlu0 %1381, %v555_v40  }
  0x7e   : > { %594 = vperm.xlu1 %1383, %v544_v41  }
  0x82   : > { %684 = vperm.xlu1 %1383, %v562_v42  }
  0x86   : > { %604 = vperm.xlu1 %1383, %v546_v43  }
  0x8a   : > { %694 = vperm.xlu1 %1383, %v564_v44  }
  0x8e   : > { %614 = vperm.xlu1 %1383, %v548_v45   ;;  %v338_v46 = vpop.permute.xlu1 %337  ;;  %v390_v47 = vpop.permute.xlu0 %389 }
  0x8f   : > { %v372_v10 = vmul.f32 %v1727_v3, %v338_v46  ;;  %v424_v15 = vmul.f32 %v1736_v11, %v390_v47 }
  0x92   : > { %704 = vperm.xlu1 %1383, %v566_v48   ;;  %v342_v49 = vpop.permute.xlu1 %341  ;;  %v1699_v50 = vpop.permute.xlu0 %397 }
  0x93   : > { %v373_v13 = vmul.f32 %v1727_v3, %v342_v49  ;;  %v426_v37 = vmul.f32 %v1736_v11, %v1699_v50 }
  0x96   : > { %624 = vperm.xlu1 %1383, %v550_v51   ;;  %v1705_v52 = vpop.permute.xlu0 %409 }
  0x97   : > { %v394_v53 = vpop.permute.xlu1 %393 }
  0x98   : > { %v425_v20 = vmul.f32 %v1736_v11, %v394_v53 }
  0x9a   : > { %714 = vperm.xlu1 %1383, %v568_v54  }
  0x9b   : > { %v1711_v56 = vpop.permute.xlu0 %353 }
  0x9c   : > { %v297_v59 = vpop.permute.xlu1 %296  ;;  %v376_v50 = vmul.f32 %v1727_v3, %v1711_v56 }
  0x9d   : > { %v330_v34 = vmul.f32 %v1729_v5, %v297_v59 }
  0x9e   : > { %634 = vperm.xlu1 %1383, %v552_v57  }
  0x9f   : > { %v1719_v60 = vpop.permute.xlu0 %365 }
  0xa1   : > { %v346_v1 = vpop.permute.xlu1 %345 }
  0xa2   : > { %724 = vperm.xlu1 %1383, %v570_v61   ;;  %v374_v33 = vmul.f32 %v1727_v3, %v346_v1  ;;  %v379_v1 = vmul.f32 %v1727_v3, %v1719_v60 }
  0xa4   : > { %v287_v6 = vpop.permute.xlu0 %286  ;;  %v382_v38 = vadd.f32 %v374_v33, %v330_v34  ;;  %v1392_v33 = vld [vmem:[%s1954_s3 + $0x40] sm:$0xff]   ;;  %v1393_v34 = vld [vmem:[%s1954_s3 + $0x48] sm:$0xff]  }
  0xa5   : > { %v350_v7 = vpop.permute.xlu1 %349  ;;  %v328_v8 = vmul.f32 %v1729_v5, %v287_v6 }
  0xa6   : > { %644 = vperm.xlu1 %1383, %v554_v2   ;;  %v375_v39 = vmul.f32 %v1727_v3, %v350_v7  ;;  %v434_v43 = vadd.f32 %v426_v37, %v382_v38  ;;  %v1396_v37 = vld [vmem:[%s1954_s3 + $0x60] sm:$0xff]   ;;  %v1397_v38 = vld [vmem:[%s1954_s3 + $0x68] sm:$0xff]  }
  0xa7   : > { %v380_v16 = vadd.f32 %v372_v10, %v328_v8  ;;  %v429_v8 = vmul.f32 %v1736_v11, %v1705_v52 }
  0xa8   : > { %v292_v12 = vpop.permute.xlu0 %291 }
  0xa9   : > { %v329_v14 = vmul.f32 %v1729_v5, %v292_v12  ;;  %v432_v21 = vadd.f32 %v424_v15, %v380_v16 }
  0xaa   : > { %1074 = vperm.xlu1 %1383, %v1071_v9   ;;  %v402_v17 = vpop.permute.xlu1 %401 }
  0xab   : > { %v381_v18 = vadd.f32 %v373_v13, %v329_v14  ;;  %v427_v42 = vmul.f32 %v1736_v11, %v402_v17 }
  0xac   : > { %v302_v19 = vpop.permute.xlu0 %301 }
  0xad   : > { %v433_v23 = vadd.f32 %v425_v20, %v381_v18  ;;  %v331_v35 = vmul.f32 %v1729_v5, %v302_v19 }
  0xaf   : > { %v451_v22 = vpop.permute.xlu1 %450  ;;  %v383_v40 = vadd.f32 %v375_v39, %v331_v35  ;;  %v1394_v35 = vld [vmem:[%s1954_s3 + $0x50] sm:$0xff]  }
  0xb0   : > { %v488_v24 = vadd.f32 %v451_v22, %v432_v21  ;;  %v456_v25 = vpop.permute.xlu0 %455  ;;  %v1398_v39 = vld [vmem:[%s1954_s3 + $0x70] sm:$0xff]  }
  0xb1   : > { %v489_v26 = vadd.f32 %v456_v25, %v433_v23  ;;  %v435_v45 = vadd.f32 %v427_v42, %v383_v40  ;;  %v1399_v40 = vld [vmem:[%s1954_s3 + $0x78] sm:$0xff]  }
  0xb2   : > { %v496_v27 = vmax.f32 %v488_v24, 0.0 }
  0xb3   : > { %v497_v28 = vmax.f32 %v489_v26, 0.0  ;;  %v307_v29 = vpop.permute.xlu1 %306 }
  0xb4   : > { %v332_v55 = vmul.f32 %v1729_v5, %v307_v29  ;;  %v317_v57 = vpop.permute.xlu0 %316  ;;  %v1388_v29 = vld [vmem:[%s1954_s3 + $0x20] sm:$0xff]  }
  0xb5   : > { %v504_v30 = vpack.c.bf16 %v497_v28, %v496_v27  ;;  %v334_v12 = vmul.f32 %v1729_v5, %v317_v57  ;;  %v1386_v27 = vld [vmem:[%s1954_s3 + $0x10] sm:$0xff]   ;;  %v1387_v28 = vld [vmem:[%s1954_s3 + $0x18] sm:$0xff]  }
  0xb6   : > { %v384_v62 = vadd.f32 %v376_v50, %v332_v55 }
  0xb7   : > { %v312_v31 = vpop.permute.xlu1 %311  ;;  %1287 = vmatprep.subr.bf16.mxu0 %v504_v30 }
  0xb8   : > { %1288 = vmatpush3.bf16.msra.mxu0 %v504_v30  ;;  %v333_v63 = vmul.f32 %v1729_v5, %v312_v31  ;;  %v471_v56 = vpop.permute.xlu0 %470  ;;  %v1389_v30 = vld [vmem:[%s1954_s3 + $0x28] sm:$0xff]   ;;  %v1390_v31 = vld [vmem:[%s1954_s3 + $0x30] sm:$0xff]  }
  0xbc   : > { %v358_v32 = vpop.permute.xlu1 %357  ;;  %v486_v19 = vpop.permute.xlu0 %485 }
  0xbd   : > { %v377_v58 = vmul.f32 %v1727_v3, %v358_v32  ;;  %v1391_v32 = vld [vmem:[%s1954_s3 + $0x38] sm:$0xff]  }
  0xbf   : > { %v385_v2 = vadd.f32 %v377_v58, %v333_v63 }
  0xc0   : > { %v1826_v42 = vpop.permute.xlu0 %659 }
  0xc1   : > { %v406_v36 = vpop.permute.xlu1 %405  ;;  %v437_v16 = vadd.f32 %v429_v8, %v385_v2 }
  0xc2   : > { %v428_v59 = vmul.f32 %v1736_v11, %v406_v36  ;;  %v1395_v36 = vld [vmem:[%s1954_s3 + $0x58] sm:$0xff]  }
  0xc4   : > { %v436_v4 = vadd.f32 %v428_v59, %v384_v62 }
  0xc6   : > { %v461_v41 = vpop.permute.xlu1 %460  ;;  %v492_v13 = vadd.f32 %v471_v56, %v436_v4 }
  0xc7   : > { %v490_v44 = vadd.f32 %v461_v41, %v434_v43 }
  0xc8   : > { %v500_v21 = vmax.f32 %v492_v13, 0.0 }
  0xc9   : > { %v498_v48 = vmax.f32 %v490_v44, 0.0  ;;  %v580_v44 = vpop.permute.xlu0 %579 }
  0xca   : > { %v466_v46 = vpop.permute.xlu1 %465 }
  0xcb   : > { %v491_v47 = vadd.f32 %v466_v46, %v435_v45  ;;  %v1831_v45 = vld.sshfl [vmem:[%s1956_s5] sm:$0x33 pattern:$0x76325410] }
  0xcc   : > { %v1085_v46 = vcombine.high %v1831_v45, %v1831_v45 }
  0xcd   : > { %v499_v49 = vmax.f32 %v491_v47, 0.0 }
  0xce   : > { %v322_v51 = vpop.permute.xlu1 %321  ;;  %1120 = vmatprep.mubr.bf16.mxu1 %v1085_v46 }
  0xcf   : > { %v505_v53 = vpack.c.bf16 %v499_v49, %v498_v48  ;;  %v335_v0 = vmul.f32 %v1729_v5, %v322_v51  ;;  %v1837_v48 = vpop.permute.xlu0 %669 }
  0xd1   : > { %1289 = vmatprep.subr.bf16.mxu0 %v505_v53  ;;  %v387_v9 = vadd.f32 %v379_v1, %v335_v0 }
  0xd2   : > { %1290 = vmatpush3.bf16.msra.mxu0 %v505_v53 }
  0xd3   : > { %v362_v54 = vpop.permute.xlu1 %361  ;;  %v590_v51 = vpop.permute.xlu0 %589 }
  0xd4   : > { %v378_v10 = vmul.f32 %v1727_v3, %v362_v54 }
  0xd6   : > { %v386_v17 = vadd.f32 %v378_v10, %v334_v12 }
  0xd7   : > { %v1841_v54 = vpop.permute.xlu0 %679 }
  0xd8   : > { %v414_v61 = vpop.permute.xlu1 %413 }
  0xd9   : > { %v430_v14 = vmul.f32 %v1736_v11, %v414_v61 }
  0xdb   : > { %v438_v23 = vadd.f32 %v430_v14, %v386_v17  ;;  %v600_v55 = vpop.permute.xlu0 %599 }
  0xdc   : > { %v418_v6 = vpop.permute.xlu1 %417 }
  0xdd   : > { %v431_v7 = vmul.f32 %v1736_v11, %v418_v6  ;;  %v1385_v11 = vld [vmem:[%s1954_s3 + $0x8] sm:$0xff]  }
  0xdf   : > { %v439_v15 = vadd.f32 %v431_v7, %v387_v9  ;;  %v1845_v58 = vpop.permute.xlu0 %689 }
  0xe1   : > { %v476_v60 = vpop.permute.xlu1 %475  ;;  %v495_v20 = vadd.f32 %v486_v19, %v439_v15 }
  0xe2   : > { %v493_v18 = vadd.f32 %v476_v60, %v437_v16 }
  0xe3   : > { %v503_v3 = vmax.f32 %v495_v20, 0.0  ;;  %v610_v61 = vpop.permute.xlu0 %609 }
  0xe4   : > { %v501_v22 = vmax.f32 %v493_v18, 0.0 }
  0xe5   : > { %v481_v24 = vpop.permute.xlu1 %480 }
  0xe6   : > { %v506_v52 = vpack.c.bf16 %v501_v22, %v500_v21  ;;  %v494_v25 = vadd.f32 %v481_v24, %v438_v23 }
  0xe7   : > { %v1849_v63 = vpop.permute.xlu0 %699 }
  0xe8   : > { %v502_v26 = vmax.f32 %v494_v25, 0.0  ;;  %1291 = vmatprep.subr.bf16.mxu0 %v506_v52 }
  0xe9   : > { %1292 = vmatpush3.bf16.msra.mxu0 %v506_v52  ;;  %v1824_v41 = vpop.permute.xlu1 %654 }
  0xea   : > { %v507_v5 = vpack.c.bf16 %v503_v3, %v502_v26 }
  0xeb   : > { %v620_v1 = vpop.permute.xlu0 %619 }
  0xec   : > { %1293 = vmatprep.subr.bf16.mxu0 %v507_v5 }
  0xed   : > { %1294 = vmatpush3.bf16.msra.mxu0 %v507_v5  ;;  %v575_v43 = vpop.permute.xlu1 %574 }
  0xef   : > { %v1853_v4 = vpop.permute.xlu0 %709 }
  0xf0   : > { %1296 = vmatmul.mubr.msk.bf16.vlgmr.msra.gmra.mrb[0].mxu0 %vm812_vm0, %v1385_v11 }
  0xf1   : > { %1299 = vmatprep.mubr.msk.bf16.mxu0 %vm812_vm0, %v1386_v27  ;;  %v1835_v47 = vpop.permute.xlu1 %664 }
  0xf3   : > { %v630_v9 = vpop.permute.xlu0 %629 }
  0xf5   : > { %v585_v49 = vpop.permute.xlu1 %584 }
  0xf7   : > { %v1859_v21 = vpop.permute.xlu0 %719 }
  0xf8   : > { %1300 = vmatmul.mubr.msk.bf16.gmra.mrb[4].mxu0 %vm812_vm0, %v1387_v28 }
  0xf9   : > { %1303 = vmatprep.mubr.msk.bf16.mxu0 %vm812_vm0, %v1388_v29  ;;  %v1839_v53 = vpop.permute.xlu1 %674 }
  0xfd   : > { %v595_v50 = vpop.permute.xlu1 %594 }
 0x100   : > { %1304 = vmatmul.mubr.msk.bf16.gmra.mrb[8].mxu0 %vm812_vm0, %v1389_v30  ;;  %v640_v30 = vpop.permute.xlu0 %639 }
 0x101   : > { %1307 = vmatprep.mubr.msk.bf16.mxu0 %vm812_vm0, %v1390_v31  ;;  %v1843_v57 = vpop.permute.xlu1 %684 }
 0x104   : > { %v1869_v46 = vpop.permute.xlu0 %729 }
 0x105   : > { %v605_v59 = vpop.permute.xlu1 %604 }
 0x108   : > { %1308 = vmatmul.mubr.msk.bf16.gmra.mrb[12].mxu0 %vm812_vm0, %v1391_v32 }
 0x109   : > { %1311 = vmatprep.mubr.msk.bf16.mxu0 %vm812_vm0, %v1392_v33  ;;  %v1847_v62 = vpop.permute.xlu1 %694 }
 0x10d   : > { %v615_v0 = vpop.permute.xlu1 %614 }
 0x110   : > { %1312 = vmatmul.mubr.msk.bf16.gmra.mrb[16].mxu0 %vm812_vm0, %v1393_v34 }
 0x111   : > { %1315 = vmatprep.mubr.msk.bf16.mxu0 %vm812_vm0, %v1394_v35  ;;  %v1851_v2 = vpop.permute.xlu1 %704 }
 0x115   : > { %v625_v6 = vpop.permute.xlu1 %624 }
 0x118   : > { %1316 = vmatmul.mubr.msk.bf16.gmra.mrb[20].mxu0 %vm812_vm0, %v1395_v36 }
 0x119   : > { %1319 = vmatprep.mubr.msk.bf16.mxu0 %vm812_vm0, %v1396_v37  ;;  %v1855_v17 = vpop.permute.xlu1 %714 }
 0x11d   : > { %v635_v11 = vpop.permute.xlu1 %634 }
 0x120   : > { %1320 = vmatmul.mubr.msk.bf16.gmra.mrb[24].mxu0 %vm812_vm0, %v1397_v38 }
 0x121   : > { %1323 = vmatprep.mubr.msk.bf16.mxu0 %vm812_vm0, %v1398_v39  ;;  %v1867_v38 = vpop.permute.xlu1 %724 }
 0x128   : > { %1324 = vmatmul.mubr.msk.bf16.gmra.mrb[28].mxu0 %vm812_vm0, %v1399_v40 }
 0x1c3   : > { %v1297_v56 = vpop.f32.mrb[0].mxu0 }
 0x1c4   : > { %v904_v7 = vadd.f32 %v1297_v56, %v585_v49  ;;  %v895_v8 = vpop.f32.mrb[1].mxu0  ;;  %v645_v56 = vpop.permute.xlu1 %644 }
 0x1c5   : > { %v896_v10 = vadd.f32 %v895_v8, %v575_v43  ;;  %v1298_v12 = vpop.f32.mrb[2].mxu0 }
 0x1c6   : > { %v907_v13 = vadd.f32 %v1298_v12, %v590_v51  ;;  %v898_v14 = vpop.f32.mrb[3].mxu0  ;;  %v1024_v16 = vmax.f32 %v904_v7, 0.0  ;;  %v650_v12 = vpop.permute.xlu0 %649 }
 0x1c7   : > { %v899_v15 = vadd.f32 %v898_v14, %v580_v44  ;;  %v1022_v18 = vmax.f32 %v896_v10, 0.0 }
 0x1c8   : > { %v1025_v60 = vmax.f32 %v907_v13, 0.0 }
 0x1c9   : > { %v1023_v19 = vmax.f32 %v899_v15, 0.0 }
 0x1ca   : > { %v1857_v20 = vpack.c.bf16 %v1025_v60, %v1024_v16 }
 0x1cb   : > { %v1301_v22 = vpop.f32.mrb[4].mxu0  ;;  %v1861_v23 = vpack.c.bf16 %v1023_v19, %v1022_v18 }
 0x1cc   : > { %v920_v24 = vadd.f32 %v1301_v22, %v605_v59  ;;  %v911_v52 = vpop.f32.mrb[5].mxu0 }
 0x1cd   : > { %v912_v25 = vadd.f32 %v911_v52, %v595_v50  ;;  %v1302_v26 = vpop.f32.mrb[6].mxu0 }
 0x1ce   : > { %v923_v3 = vadd.f32 %v1302_v26, %v610_v61  ;;  %v914_v5 = vpop.f32.mrb[7].mxu0  ;;  %v1028_v28 = vmax.f32 %v920_v24, 0.0 }
 0x1cf   : > { %v915_v27 = vadd.f32 %v914_v5, %v600_v55  ;;  %v1026_v31 = vmax.f32 %v912_v25, 0.0 }
 0x1d0   : > { %v1029_v29 = vmax.f32 %v923_v3, 0.0 }
 0x1d1   : > { %v1027_v32 = vmax.f32 %v915_v27, 0.0 }
 0x1d2   : > { %v1863_v33 = vpack.c.bf16 %v1029_v29, %v1028_v28 }
 0x1d3   : > { %v1865_v34 = vpack.c.bf16 %v1027_v32, %v1026_v31  ;;  %v1305_v35 = vpop.f32.mrb[8].mxu0 }
 0x1d4   : > { %v936_v36 = vadd.f32 %v1305_v35, %v625_v6  ;;  %v927_v37 = vpop.f32.mrb[9].mxu0 }
 0x1d5   : > { %v928_v39 = vadd.f32 %v927_v37, %v615_v0  ;;  %v1306_v40 = vpop.f32.mrb[10].mxu0 }
 0x1d6   : > { %v939_v43 = vadd.f32 %v1306_v40, %v630_v9  ;;  %v930_v44 = vpop.f32.mrb[11].mxu0  ;;  %v1032_v51 = vmax.f32 %v936_v36, 0.0 }
 0x1d7   : > { %v931_v49 = vadd.f32 %v930_v44, %v620_v1  ;;  %v1030_v55 = vmax.f32 %v928_v39, 0.0 }
 0x1d8   : > { %v1033_v50 = vmax.f32 %v939_v43, 0.0 }
 0x1d9   : > { %v1031_v59 = vmax.f32 %v931_v49, 0.0 }
 0x1da   : > { %v1871_v61 = vpack.c.bf16 %v1033_v50, %v1032_v51 }
 0x1db   : > { %v1873_v7 = vpack.c.bf16 %v1031_v59, %v1030_v55  ;;  %v1309_v6 = vpop.f32.mrb[12].mxu0 }
 0x1dc   : > { %v952_v8 = vadd.f32 %v1309_v6, %v645_v56  ;;  %v943_v10 = vpop.f32.mrb[13].mxu0 }
 0x1dd   : > { %v944_v0 = vadd.f32 %v943_v10, %v635_v11  ;;  %v1310_v13 = vpop.f32.mrb[14].mxu0 }
 0x1de   : > { %v955_v9 = vadd.f32 %v1310_v13, %v650_v12  ;;  %v946_v14 = vpop.f32.mrb[15].mxu0  ;;  %v1036_v16 = vmax.f32 %v952_v8, 0.0 }
 0x1df   : > { %v947_v15 = vadd.f32 %v946_v14, %v640_v30  ;;  %v1034_v60 = vmax.f32 %v944_v0, 0.0 }
 0x1e0   : > { %v1037_v1 = vmax.f32 %v955_v9, 0.0 }
 0x1e1   : > { %v1035_v18 = vmax.f32 %v947_v15, 0.0 }
 0x1e2   : > { %v1875_v19 = vpack.c.bf16 %v1037_v1, %v1036_v16 }
 0x1e3   : > { %v1877_v22 = vpack.c.bf16 %v1035_v18, %v1034_v60  ;;  %v1313_v24 = vpop.f32.mrb[16].mxu0 }
 0x1e4   : > { %v968_v52 = vadd.f32 %v1313_v24, %v1835_v47  ;;  %v959_v25 = vpop.f32.mrb[17].mxu0 }
 0x1e5   : > { %v960_v26 = vadd.f32 %v959_v25, %v1824_v41  ;;  %v1314_v3 = vpop.f32.mrb[18].mxu0 }
 0x1e6   : > { %v971_v5 = vadd.f32 %v1314_v3, %v1837_v48  ;;  %v962_v11 = vpop.f32.mrb[19].mxu0  ;;  %v1040_v28 = vmax.f32 %v968_v52, 0.0 }
 0x1e7   : > { %v963_v27 = vadd.f32 %v962_v11, %v1826_v42  ;;  %v1038_v30 = vmax.f32 %v960_v26, 0.0 }
 0x1e8   : > { %v1041_v29 = vmax.f32 %v971_v5, 0.0 }
 0x1e9   : > { %v1039_v31 = vmax.f32 %v963_v27, 0.0 }
 0x1ea   : > { %v1063_v32 = vpack.c.bf16 %v1041_v29, %v1040_v28 }
 0x1eb   : > { %v1317_v35 = vpop.f32.mrb[20].mxu0  ;;  %v1062_v36 = vpack.c.bf16 %v1039_v31, %v1038_v30 }
 0x1ec   : > { %v984_v37 = vadd.f32 %v1317_v35, %v1843_v57  ;;  %v975_v39 = vpop.f32.mrb[21].mxu0 }
 0x1ed   : > { %v976_v47 = vadd.f32 %v975_v39, %v1839_v53  ;;  %v1318_v40 = vpop.f32.mrb[22].mxu0  ;;  %1265 = vmatprep.subr.bf16.mxu1 %v1062_v36 }
 0x1ee   : > { %v987_v41 = vadd.f32 %v1318_v40, %v1845_v58  ;;  %v978_v48 = vpop.f32.mrb[23].mxu0  ;;  %1266 = vmatpush3.bf16.msra.mxu1 %v1861_v23  ;;  %v1044_v43 = vmax.f32 %v984_v37, 0.0 }
 0x1ef   : > { %v979_v42 = vadd.f32 %v978_v48, %v1841_v54  ;;  %1267 = vmatprep.subr.bf16.mxu1 %v1063_v32  ;;  %v1042_v49 = vmax.f32 %v976_v47, 0.0 }
 0x1f0   : > { %v1045_v44 = vmax.f32 %v987_v41, 0.0 }
 0x1f1   : > { %v1043_v51 = vmax.f32 %v979_v42, 0.0 }
 0x1f2   : > { %v1065_v50 = vpack.c.bf16 %v1045_v44, %v1044_v43  ;;  %1268 = vmatpush3.bf16.msra.mxu1 %v1857_v20 }
 0x1f3   : > { %v1064_v57 = vpack.c.bf16 %v1043_v51, %v1042_v49  ;;  %v1321_v55 = vpop.f32.mrb[24].mxu0 }
 0x1f4   : > { %v1000_v53 = vadd.f32 %v1321_v55, %v1851_v2  ;;  %v991_v59 = vpop.f32.mrb[25].mxu0 }
 0x1f5   : > { %v992_v58 = vadd.f32 %v991_v59, %v1847_v62  ;;  %v1322_v56 = vpop.f32.mrb[26].mxu0  ;;  %1269 = vmatprep.subr.bf16.mxu1 %v1064_v57 }
 0x1f6   : > { %v1003_v23 = vadd.f32 %v1322_v56, %v1853_v4  ;;  %v994_v54 = vpop.f32.mrb[27].mxu0  ;;  %1270 = vmatpush3.bf16.msra.mxu1 %v1865_v34  ;;  %v1048_v8 = vmax.f32 %v1000_v53, 0.0 }
 0x1f7   : > { %v995_v6 = vadd.f32 %v994_v54, %v1849_v63  ;;  %1271 = vmatprep.subr.bf16.mxu1 %v1065_v50  ;;  %v1046_v20 = vmax.f32 %v992_v58, 0.0 }
 0x1f8   : > { %v1049_v10 = vmax.f32 %v1003_v23, 0.0 }
 0x1f9   : > { %v1047_v12 = vmax.f32 %v995_v6, 0.0 }
 0x1fa   : > { %v1067_v0 = vpack.c.bf16 %v1049_v10, %v1048_v8  ;;  %1272 = vmatpush3.bf16.msra.mxu1 %v1863_v33 }
 0x1fb   : > { %v1066_v2 = vpack.c.bf16 %v1047_v12, %v1046_v20  ;;  %v1325_v13 = vpop.f32.mrb[28].mxu0 }
 0x1fc   : > { %v1016_v62 = vadd.f32 %v1325_v13, %v1867_v38  ;;  %v1007_v9 = vpop.f32.mrb[29].mxu0 }
 0x1fd   : > { %v1008_v4 = vadd.f32 %v1007_v9, %v1855_v17  ;;  %v1326_v14 = vpop.f32.mrb[30].mxu0  ;;  %1273 = vmatprep.subr.bf16.mxu1 %v1066_v2 }
 0x1fe   : > { %v1019_v34 = vadd.f32 %v1326_v14, %v1869_v46  ;;  %v1010_v63 = vpop.f32.mrb[31].mxu0  ;;  %1274 = vmatpush3.bf16.msra.mxu1 %v1873_v7  ;;  %v1052_v16 = vmax.f32 %v1016_v62, 0.0 }
 0x1ff   : > { %v1011_v15 = vadd.f32 %v1010_v63, %v1859_v21  ;;  %1275 = vmatprep.subr.bf16.mxu1 %v1067_v0  ;;  %v1050_v1 = vmax.f32 %v1008_v4, 0.0 }
 0x200   : > { %v1053_v33 = vmax.f32 %v1019_v34, 0.0 }
 0x201   : > { %v1051_v60 = vmax.f32 %v1011_v15, 0.0 }
 0x202   : > { %v1069_v38 = vpack.c.bf16 %v1053_v33, %v1052_v16  ;;  %1276 = vmatpush3.bf16.msra.mxu1 %v1871_v61  ;;  %v1075_v61 = vpop.permute.xlu1 %1074 }
 0x203   : > { %v1068_v17 = vpack.c.bf16 %v1051_v60, %v1050_v1 }
 0x205   : > { %1277 = vmatprep.subr.bf16.mxu1 %v1068_v17 }
 0x206   : > { %1278 = vmatpush3.bf16.msra.mxu1 %v1877_v22 }
 0x207   : > { %1279 = vmatprep.subr.bf16.mxu1 %v1069_v38 }
 0x20a   : > { %1280 = vmatpush3.bf16.msra.mxu1 %v1875_v19 }
 0x20d   : > { %1121 = vmatmul.mubr.bf16.vlgmr.msra.gmra.mrb[0].mxu1 %v1831_v45 }
 0x2e0   : > { %v1281_v21 = vpop.f32.mrb[0].mxu1 }
 0x2e1   : > { %v1282_v46 = vpop.f32.mrb[1].mxu1 }
 0x2e2   : > { %v1283_v7 = vadd.f32 %v1282_v46, %v1281_v21  ;;  %v1284_v18 = vpop.f32.mrb[2].mxu1 }
 0x2e3   : > { %v1285_v24 = vpop.f32.mrb[3].mxu1 }
 0x2e4   : > { %v1123_v52 = vadd.f32 %v1283_v7, %v1075_v61 }
 0x2e6   : > { %1128 = vst [vmem:[%s269_s13] sm:$0xf] %v1123_v52 }
 0x2e7   : > { %1413 = shalt.err (!%p1410_p3)
}
 0x2e8   : > { %s1414_s22 = scalar_lea.hbm %s1909_s17, 64  ;;  %s1418_s8 = scalar_lea.hbm %s1958_s7, 128 }
 0x2e9   : > { %p1415_p4 = scmp.ne.s32.totalorder %s1909_s17, %s1414_s22  ;;  %p1419_p9 = scmp.lt.u32.totalorder %s1909_s17, %s1958_s7 }
 0x2ea   : > { %p1420_p10 = scmp.lt.u32.totalorder %s1418_s8, %s1414_s22  ;;  %p1422_p12 = scmp.lt.u32.totalorder %s1414_s22, %s1909_s17 }
 0x2eb   : > { %p1416_p7 = pnand %p1415_p4, %p1546_p5 }
 0x2ec   : > { %p1421_p11 = por %p1420_p10, %p1419_p9 }
 0x2ed   : > { %p1417_p8 = pneg %p1416_p7 }
 0x2ee   : > { %p1423_p13 = por %p1422_p12, %p1421_p11 }
 0x2f0   : > { %p1424_p0 = pnand %p1423_p13, %p1417_p8 }
 0x2f2   : > { %1427 = shalt.err (!%p1424_p0)
}
 0x2f3   : > { %1327 = dma.vmem_to_hbm [thread:$0]  (%p1546_p5), %s1911_s14, 64, %s1909_s17, %s1130_s18  }
 0x2f4 PF: > { %p1333_p1 = scmp.ge.s32.totalorder %s1462_s27, 2  ;;  %s1155_s15 = sand.u32 1, %s1450_s24  }
 0x2f5   : > { %s1156_s16 = scalar_lea.sflag [#allocation3], %s1155_s15 }
 0x2f6   : > { %p1330_p2 = pnand %p1333_p1, %p1550_p6 }
 0x2f8   : > { %1445 = dma.done.wait (!%p1330_p2), %s1156_s16, 64  }
 0x2f9   : > { %1447 = vsyncadd (!%p1330_p2), %s1156_s16, 4294967232  ;;  %p17_p3 = scmp.ge.s32.totalorder %s1533_s30, 4   ;;  %s1961_s24 = smov %s1454_s25 }
 0x2fa   : > { %s1962_s25 = smov %s1458_s26  ;;  %s1963_s26 = smov %s1544_s10 }
 0x2fb   : > { %s1964_s27 = smov %s1533_s30  ;;  %19 = sbr.rel (!%p17_p3) target bundleno = 3 (0x3), region = 83 }
 0x302   :  { %1161 = vsyncpa [#allocation3], 1 }
 0x303   :  { %1163 = vsyncpa [#allocation3 + $0x1], 1 }

// kernel: tpu_custom_call.1
= control target key start
LH: loop header
LB: loop body
LE: loop exit
PB: predicated region body
PF: predicated region fallthrough
CT: control target
= control target key end

     0   :  { %12 = vsyncpa [#allocation3], 0  ;;  %s1951_s0 = inlined_call_operand.vmem [shape: f32[3,256], index: 0, kind: input, shape index: {}]   ;;  %s1952_s1 = inlined_call_operand.vmem [shape: f32[64,3], index: 1, kind: input, shape index: {}]   ;;  %s1953_s2 = inlined_call_operand.vmem [shape: f32[64,1], index: 2, kind: input, shape index: {}]   ;;  %s1954_s3 = inlined_call_operand.vmem [shape: bf16[256,64], index: 3, kind: input, shape index: {}]   ;;  %s1955_s4 = inlined_call_operand.vmem [shape: f32[256,1], index: 4, kind: input, shape index: {}]   ;;  %s1956_s5 = inlined_call_operand.vmem [shape: bf16[4,256], index: 5, kind: input, shape index: {}]   ;;  %s1957_s6 = inlined_call_operand.vmem [shape: f32[4,1], index: 6, kind: input, shape index: {}]   ;;  %s1958_s7 = inlined_call_operand.hbm [shape: f32[4,256], index: 7, kind: output, shape index: {}]  }
   0x1   :  { %14 = vsyncpa [#allocation3 + $0x1], 0  ;;  %s1508_s24 = smov 0   ;;  %s1510_s25 = smov 0  }
   0x2   :  { %s1512_s26 = smov 0   ;;  %s1514_s27 = smov 0  }
   0x3 LB: > { %s1529_s28 = sadd.s32 4294967295, %s1462_s27   ;;  %s1202_s29 = sadd.s32 4294967294, %s1462_s27   ;;  %s1462_s27 = sphi %s1514_s27, %s1964_s27   ;;  %s1458_s26 = sphi %s1512_s26, %s1963_s26   ;;  %s1454_s25 = sphi %s1510_s25, %s1962_s25   ;;  %s1450_s24 = sphi %s1508_s24, %s1961_s24  }
   0x4   : > { %s1533_s30 = sadd.s32 1, %s1462_s27   ;;  %s179_s8 = sadd.s32 1, %s1458_s26 }
   0x5   : > { %s176_s9 = ssub.s32 %s1462_s27, %s1533_s30  ;;  %p189_p0 = scmp.ne.s32.totalorder %s1458_s26, %s1454_s25 }
   0x6   : > { %p177_p1 = scmp.eq.s32.totalorder %s176_s9, 0  ;;  %p190_p2 = scmp.eq.s32.totalorder %s1529_s28, 1 }
   0x7   : > { %p195_p3 = scmp.ne.s32.totalorder %s1454_s25, %s1450_s24  ;;  %p196_p4 = scmp.eq.s32.totalorder %s1202_s29, 1 }
   0x8   : > { %s1544_s10 = scalar_select %p177_p1, %s1458_s26, %s179_s8  }
   0x9   : > { %p1546_p5 = por %p190_p2, %p189_p0  ;;  %p1550_p6 = por %p196_p4, %p195_p3 }
   0xa   : > { %p1205_p7 = scmp.ge.s32.totalorder %s1462_s27, 1  ;;  %p239_p8 = scmp.lt.s32.totalorder %s1462_s27, 3 }
   0xc   : > { %p240_p9 = pnand %p1205_p7, %p239_p8 }
   0xd   : > { %v276_v0 = vld [vmem:[%s1952_s1] sm:$0xff] (!%p240_p9)  ;;  %v1464_v1 = vmov (!%p240_p9), 2   ;;  %v1465_v2 = vmov (!%p240_p9), 1   ;;  %v278_v3 = vld [vmem:[%s1952_s1 + $0x10] sm:$0xff] (!%p240_p9)  ;;  %v277_v4 = vld [vmem:[%s1952_s1 + $0x8] sm:$0xff] (!%p240_p9)  ;;  %v1466_v7 = vmov (!%p240_p9), 0   ;;  %v324_v55 = vlaneseq (!%p240_p9) }
   0xe   : > { %243 = sbr.rel (%p240_p9) target bundleno = 756 (0x2f4), region = 48  ;;  %1370 = vset.pattern.permute.xlu0 (!%p240_p9), %v1464_v1  ;;  %1369 = vset.pattern.permute.xlu1 (!%p240_p9), %v1465_v2  ;;  %v281_v5 = vld [vmem:[%s1952_s1 + $0x28] sm:$0xff] (!%p240_p9)  ;;  %v280_v6 = vld [vmem:[%s1952_s1 + $0x20] sm:$0xff] (!%p240_p9)  ;;  %v283_v8 = vld [vmem:[%s1952_s1 + $0x38] sm:$0xff] (!%p240_p9)  ;;  %vm812_vm0 = vcmask (!%p240_p9), 523264   ;;  %p270_p10 = scmp.lt.s32.totalorder (!%p240_p9), %s1529_s28, 1 }
   0xf   : > { %389 = vperm.xlu0 (!%p240_p9), %1370, %v276_v0   ;;  %337 = vperm.xlu1 (!%p240_p9), %1369, %v276_v0   ;;  %v279_v9 = vld [vmem:[%s1952_s1 + $0x18] sm:$0xff] (!%p240_p9)  ;;  %v440_v10 = vld [vmem:[%s1953_s2] sm:$0xff] (!%p240_p9)  ;;  %v441_v11 = vld [vmem:[%s1953_s2 + $0x8] sm:$0xff] (!%p240_p9)  ;;  %v325_v58 = vshrl.u32 (!%p240_p9), %v324_v55, 7  ;;  %s267_s29 = sand.u32 (!%p240_p9), 1, %s1454_s25   ;;  %s1242_s9 = sshll.u32 (!%p240_p9), %s1529_s28, 6 }
  0x10   : > { %v282_v12 = vld [vmem:[%s1952_s1 + $0x30] sm:$0xff] (!%p240_p9)  ;;  %v444_v13 = vld [vmem:[%s1953_s2 + $0x20] sm:$0xff] (!%p240_p9)  ;;  %v447_v14 = vld [vmem:[%s1953_s2 + $0x38] sm:$0xff] (!%p240_p9)  ;;  %s1206_s8 = sshll.u32 (!%p240_p9), %s267_s29, 2  ;;  %s1909_s17 = scalar_lea.hbm (!%p240_p9), %s1958_s7, %s1242_s9 }
  0x11   : > { %v557_v15 = vld [vmem:[%s1955_s4 + $0x88] sm:$0xff] (!%p240_p9)  ;;  %v442_v17 = vld [vmem:[%s1953_s2 + $0x10] sm:$0xff] (!%p240_p9)  ;;  %v559_v18 = vld [vmem:[%s1955_s4 + $0x98] sm:$0xff] (!%p240_p9)  ;;  %v370_v62 = vsub.s32 (!%p240_p9), 1, %v325_v58  ;;  %v326_v63 = vsub.s32 (!%p240_p9), 0, %v325_v58  ;;  %s1130_s18 = scalar_lea.sflag (!%p240_p9), [#allocation3], %s267_s29 }
  0x12   : > { %v541_v16 = vld [vmem:[%s1955_s4 + $0x8] sm:$0xff] (!%p240_p9)  ;;  %v443_v19 = vld [vmem:[%s1953_s2 + $0x18] sm:$0xff] (!%p240_p9)  ;;  %v446_v28 = vld [vmem:[%s1953_s2 + $0x30] sm:$0xff] (!%p240_p9) }
  0x13   : > { %397 = vperm.xlu0 (!%p240_p9), %1370, %v278_v3   ;;  %341 = vperm.xlu1 (!%p240_p9), %1369, %v277_v4   ;;  %v543_v20 = vld [vmem:[%s1955_s4 + $0x18] sm:$0xff] (!%p240_p9)  ;;  %v561_v21 = vld [vmem:[%s1955_s4 + $0xa8] sm:$0xff] (!%p240_p9)  ;;  %v556_v30 = vld [vmem:[%s1955_s4 + $0x80] sm:$0xff] (!%p240_p9) }
  0x14   : > { %v545_v22 = vld [vmem:[%s1955_s4 + $0x28] sm:$0xff] (!%p240_p9)  ;;  %v563_v23 = vld [vmem:[%s1955_s4 + $0xb8] sm:$0xff] (!%p240_p9)  ;;  %v540_v32 = vld [vmem:[%s1955_s4] sm:$0xff] (!%p240_p9) }
  0x15   : > { %v547_v24 = vld [vmem:[%s1955_s4 + $0x38] sm:$0xff]  ;;  %v565_v25 = vld [vmem:[%s1955_s4 + $0xc8] sm:$0xff]  ;;  %v1384_v33 = vld [vmem:[%s1954_s3] sm:$0xff]   ;;  %s271_s19 = scalar_select %p270_p10, %s1529_s28, 1 }
  0x16   : > { %v445_v26 = vld [vmem:[%s1953_s2 + $0x28] sm:$0xff]  ;;  %v567_v29 = vld [vmem:[%s1955_s4 + $0xd8] sm:$0xff]  ;;  %v558_v35 = vld [vmem:[%s1955_s4 + $0x90] sm:$0xff]  ;;  %1295 = vmatprep.mubr.msk.bf16.mxu0 %vm812_vm0, %v1384_v33 }
  0x17   : > { %409 = vperm.xlu0 %1370, %v281_v5   ;;  %1371 = vset.pattern.permute.xlu1 %v1464_v1  ;;  %v549_v27 = vld [vmem:[%s1955_s4 + $0x48] sm:$0xff]  ;;  %v551_v31 = vld [vmem:[%s1955_s4 + $0x58] sm:$0xff]  ;;  %v542_v37 = vld [vmem:[%s1955_s4 + $0x10] sm:$0xff]  ;;  %s1207_s22 = sshll.u32 %s271_s19, 2  ;;  %s1467_s19 = smov [#allocation2]  }
  0x18   : > { %393 = vperm.xlu1 %1371, %v277_v4   ;;  %v569_v34 = vld [vmem:[%s1955_s4 + $0xe8] sm:$0xff]  ;;  %v571_v38 = vld [vmem:[%s1955_s4 + $0xf8] sm:$0xff]  ;;  %v560_v39 = vld [vmem:[%s1955_s4 + $0xa0] sm:$0xff]  ;;  %s273_s13 = scalar_lea.vmem %s1951_s0, %s1207_s22  ;;  %s1404_s20 = sshll.u32 %s1467_s19, 4  ;;  %s1405_s20 = int_to_ptr.vmem [resolvable:$false] %s1404_s20 }
  0x19   : > { %v553_v36 = vld [vmem:[%s1955_s4 + $0x68] sm:$0xff]  ;;  %v555_v40 = vld [vmem:[%s1955_s4 + $0x78] sm:$0xff]  ;;  %v544_v41 = vld [vmem:[%s1955_s4 + $0x20] sm:$0xff]  ;;  %s1406_s21 = scalar_lea.vmem %s1405_s20, 128 }
  0x1a   : > { %v562_v42 = vld [vmem:[%s1955_s4 + $0xb0] sm:$0xff]  ;;  %v564_v44 = vld [vmem:[%s1955_s4 + $0xc0] sm:$0xff] }
  0x1b   : > { %1378 = vset.pattern.permute.xlu0 %v1465_v2  ;;  %v546_v43 = vld [vmem:[%s1955_s4 + $0x30] sm:$0xff]  ;;  %v548_v45 = vld [vmem:[%s1955_s4 + $0x40] sm:$0xff] }
  0x1c   : > { %353 = vperm.xlu0 %1378, %v280_v6   ;;  %1372 = vset.pattern.permute.xlu1 %v1466_v7  ;;  %v566_v48 = vld [vmem:[%s1955_s4 + $0xd0] sm:$0xff]  ;;  %v568_v54 = vld [vmem:[%s1955_s4 + $0xe0] sm:$0xff] }
  0x1d   : > { %296 = vperm.xlu1 %1372, %v278_v3   ;;  %v550_v51 = vld [vmem:[%s1955_s4 + $0x50] sm:$0xff]  ;;  %v552_v57 = vld [vmem:[%s1955_s4 + $0x60] sm:$0xff] }
  0x1e   : > { %v570_v61 = vld [vmem:[%s1955_s4 + $0xf0] sm:$0xff] }
  0x20   : > { %365 = vperm.xlu0 %1378, %v283_v8  }
  0x21   : > { %1373 = vset.pattern.permute.xlu1 %v1465_v2 }
  0x22   : > { %345 = vperm.xlu1 %1373, %v278_v3  }
  0x24   : > { %1381 = vset.pattern.permute.xlu0 %v1466_v7 }
  0x25   : > { %286 = vperm.xlu0 %1381, %v276_v0   ;;  %v275_v0 = vld [vmem:[%s273_s13] sm:$0x7]  ;;  %s269_s13 = scalar_lea.vmem [#allocation2], %s1206_s8 }
  0x26   : > { %349 = vperm.xlu1 %1373, %v279_v9   ;;  %v1727_v3 = vrot.slane %v275_v0, %v370_v62  ;;  %s1143_s14 = sshll.u32 %s269_s13, 4  ;;  %s1911_s14 = int_to_ptr.vmem [resolvable:$true] %s1143_s14 }
  0x27   : > { %s1400_s28 = scalar_lea.vmem %s1911_s14, 64  ;;  %p1407_p0 = scmp.lt.s32.totalorder %s1911_s14, %s1405_s20 }
  0x28   : > { %p1401_p11 = scmp.ne.s32.totalorder %s1911_s14, %s1400_s28  ;;  %p1408_p1 = scmp.lt.s32.totalorder %s1406_s21, %s1400_s28 }
  0x29   : > { %291 = vperm.xlu0 %1381, %v277_v4   ;;  %v422_v4 = vsub.s32 2, %v325_v58 }
  0x2a   : > { %1374 = vset.pattern.permute.xlu1 %v1464_v1  ;;  %p1402_p12 = pnand %p1401_p11, %p1546_p5  ;;  %p1409_p2 = por %p1408_p1, %p1407_p0 }
  0x2b   : > { %401 = vperm.xlu1 %1374, %v279_v9  }
  0x2c   : > { %p1403_p13 = pneg %p1402_p12 }
  0x2d   : > { %301 = vperm.xlu0 %1381, %v279_v9   ;;  %v1071_v9 = vld [vmem:[%s1957_s6] sm:$0xf] }
  0x2e   : > { %p1410_p3 = pnand %p1409_p2, %p1403_p13 }
  0x2f   : > { %1375 = vset.pattern.permute.xlu1 %v1466_v7 }
  0x30   : > { %450 = vperm.xlu1 %1375, %v440_v10  }
  0x31   : > { %455 = vperm.xlu0 %1381, %v441_v11   ;;  %v1736_v11 = vrot.slane %v275_v0, %v422_v4 }
  0x34   : > { %306 = vperm.xlu1 %1375, %v280_v6  }
  0x35   : > { %316 = vperm.xlu0 %1381, %v282_v12  }
  0x38   : > { %311 = vperm.xlu1 %1375, %v281_v5  }
  0x39   : > { %470 = vperm.xlu0 %1381, %v444_v13  }
  0x3c   : > { %1376 = vset.pattern.permute.xlu1 %v1465_v2 }
  0x3d   : > { %485 = vperm.xlu0 %1381, %v447_v14   ;;  %357 = vperm.xlu1 %1376, %v281_v5   ;;  %v1729_v5 = vrot.slane %v275_v0, %v326_v63 }
  0x41   : > { %659 = vperm.xlu0 %1381, %v557_v15   ;;  %1377 = vset.pattern.permute.xlu1 %v1464_v1 }
  0x42   : > { %405 = vperm.xlu1 %1377, %v280_v6  }
  0x45   : > { %579 = vperm.xlu0 %1381, %v541_v16  }
  0x46   : > { %1379 = vset.pattern.permute.xlu1 %v1466_v7 }
  0x47   : > { %460 = vperm.xlu1 %1379, %v442_v17  }
  0x49   : > { %669 = vperm.xlu0 %1381, %v559_v18  }
  0x4b   : > { %465 = vperm.xlu1 %1379, %v443_v19  }
  0x4d   : > { %589 = vperm.xlu0 %1381, %v543_v20  }
  0x4f   : > { %321 = vperm.xlu1 %1379, %v283_v8  }
  0x51   : > { %679 = vperm.xlu0 %1381, %v561_v21  }
  0x53   : > { %1380 = vset.pattern.permute.xlu1 %v1465_v2  ;;  %v554_v2 = vld [vmem:[%s1955_s4 + $0x70] sm:$0xff] }
  0x54   : > { %361 = vperm.xlu1 %1380, %v282_v12  }
  0x55   : > { %599 = vperm.xlu0 %1381, %v545_v22  }
  0x58   : > { %1382 = vset.pattern.permute.xlu1 %v1464_v1 }
  0x59   : > { %689 = vperm.xlu0 %1381, %v563_v23   ;;  %413 = vperm.xlu1 %1382, %v282_v12  }
  0x5d   : > { %609 = vperm.xlu0 %1381, %v547_v24   ;;  %417 = vperm.xlu1 %1382, %v283_v8  }
  0x61   : > { %699 = vperm.xlu0 %1381, %v565_v25   ;;  %1383 = vset.pattern.permute.xlu1 %v1466_v7 }
  0x62   : > { %475 = vperm.xlu1 %1383, %v445_v26  }
  0x65   : > { %619 = vperm.xlu0 %1381, %v549_v27  }
  0x66   : > { %480 = vperm.xlu1 %1383, %v446_v28  }
  0x69   : > { %709 = vperm.xlu0 %1381, %v567_v29  }
  0x6a   : > { %654 = vperm.xlu1 %1383, %v556_v30  }
  0x6d   : > { %629 = vperm.xlu0 %1381, %v551_v31  }
  0x6e   : > { %574 = vperm.xlu1 %1383, %v540_v32  }
  0x71   : > { %719 = vperm.xlu0 %1381, %v569_v34  }
  0x72   : > { %664 = vperm.xlu1 %1383, %v558_v35  }
  0x75   : > { %639 = vperm.xlu0 %1381, %v553_v36  }
  0x76   : > { %584 = vperm.xlu1 %1383, %v542_v37  }
  0x79   : > { %729 = vperm.xlu0 %1381, %v571_v38  }
  0x7a   : > { %674 = vperm.xlu1 %1383, %v560_v39  }
  0x7d   : > { %649 = vperm.xlu0 %1381, %v555_v40  }
  0x7e   : > { %594 = vperm.xlu1 %1383, %v544_v41  }
  0x82   : > { %684 = vperm.xlu1 %1383, %v562_v42  }
  0x86   : > { %604 = vperm.xlu1 %1383, %v546_v43  }
  0x8a   : > { %694 = vperm.xlu1 %1383, %v564_v44  }
  0x8e   : > { %614 = vperm.xlu1 %1383, %v548_v45   ;;  %v338_v46 = vpop.permute.xlu1 %337  ;;  %v390_v47 = vpop.permute.xlu0 %389 }
  0x8f   : > { %v372_v10 = vmul.f32 %v1727_v3, %v338_v46  ;;  %v424_v15 = vmul.f32 %v1736_v11, %v390_v47 }
  0x92   : > { %704 = vperm.xlu1 %1383, %v566_v48   ;;  %v342_v49 = vpop.permute.xlu1 %341  ;;  %v1699_v50 = vpop.permute.xlu0 %397 }
  0x93   : > { %v373_v13 = vmul.f32 %v1727_v3, %v342_v49  ;;  %v426_v37 = vmul.f32 %v1736_v11, %v1699_v50 }
  0x96   : > { %624 = vperm.xlu1 %1383, %v550_v51   ;;  %v1705_v52 = vpop.permute.xlu0 %409 }
  0x97   : > { %v394_v53 = vpop.permute.xlu1 %393 }
  0x98   : > { %v425_v20 = vmul.f32 %v1736_v11, %v394_v53 }
  0x9a   : > { %714 = vperm.xlu1 %1383, %v568_v54  }
  0x9b   : > { %v1711_v56 = vpop.permute.xlu0 %353 }
  0x9c   : > { %v297_v59 = vpop.permute.xlu1 %296  ;;  %v376_v50 = vmul.f32 %v1727_v3, %v1711_v56 }
  0x9d   : > { %v330_v34 = vmul.f32 %v1729_v5, %v297_v59 }
  0x9e   : > { %634 = vperm.xlu1 %1383, %v552_v57  }
  0x9f   : > { %v1719_v60 = vpop.permute.xlu0 %365 }
  0xa1   : > { %v346_v1 = vpop.permute.xlu1 %345 }
  0xa2   : > { %724 = vperm.xlu1 %1383, %v570_v61   ;;  %v374_v33 = vmul.f32 %v1727_v3, %v346_v1  ;;  %v379_v1 = vmul.f32 %v1727_v3, %v1719_v60 }
  0xa4   : > { %v287_v6 = vpop.permute.xlu0 %286  ;;  %v382_v38 = vadd.f32 %v374_v33, %v330_v34  ;;  %v1392_v33 = vld [vmem:[%s1954_s3 + $0x40] sm:$0xff]   ;;  %v1393_v34 = vld [vmem:[%s1954_s3 + $0x48] sm:$0xff]  }
  0xa5   : > { %v350_v7 = vpop.permute.xlu1 %349  ;;  %v328_v8 = vmul.f32 %v1729_v5, %v287_v6 }
  0xa6   : > { %644 = vperm.xlu1 %1383, %v554_v2   ;;  %v375_v39 = vmul.f32 %v1727_v3, %v350_v7  ;;  %v434_v43 = vadd.f32 %v426_v37, %v382_v38  ;;  %v1396_v37 = vld [vmem:[%s1954_s3 + $0x60] sm:$0xff]   ;;  %v1397_v38 = vld [vmem:[%s1954_s3 + $0x68] sm:$0xff]  }
  0xa7   : > { %v380_v16 = vadd.f32 %v372_v10, %v328_v8  ;;  %v429_v8 = vmul.f32 %v1736_v11, %v1705_v52 }
  0xa8   : > { %v292_v12 = vpop.permute.xlu0 %291 }
  0xa9   : > { %v329_v14 = vmul.f32 %v1729_v5, %v292_v12  ;;  %v432_v21 = vadd.f32 %v424_v15, %v380_v16 }
  0xaa   : > { %1074 = vperm.xlu1 %1383, %v1071_v9   ;;  %v402_v17 = vpop.permute.xlu1 %401 }
  0xab   : > { %v381_v18 = vadd.f32 %v373_v13, %v329_v14  ;;  %v427_v42 = vmul.f32 %v1736_v11, %v402_v17 }
  0xac   : > { %v302_v19 = vpop.permute.xlu0 %301 }
  0xad   : > { %v433_v23 = vadd.f32 %v425_v20, %v381_v18  ;;  %v331_v35 = vmul.f32 %v1729_v5, %v302_v19 }
  0xaf   : > { %v451_v22 = vpop.permute.xlu1 %450  ;;  %v383_v40 = vadd.f32 %v375_v39, %v331_v35  ;;  %v1394_v35 = vld [vmem:[%s1954_s3 + $0x50] sm:$0xff]  }
  0xb0   : > { %v488_v24 = vadd.f32 %v451_v22, %v432_v21  ;;  %v456_v25 = vpop.permute.xlu0 %455  ;;  %v1398_v39 = vld [vmem:[%s1954_s3 + $0x70] sm:$0xff]  }
  0xb1   : > { %v489_v26 = vadd.f32 %v456_v25, %v433_v23  ;;  %v435_v45 = vadd.f32 %v427_v42, %v383_v40  ;;  %v1399_v40 = vld [vmem:[%s1954_s3 + $0x78] sm:$0xff]  }
  0xb2   : > { %v496_v27 = vmax.f32 %v488_v24, 0.0 }
  0xb3   : > { %v497_v28 = vmax.f32 %v489_v26, 0.0  ;;  %v307_v29 = vpop.permute.xlu1 %306 }
  0xb4   : > { %v332_v55 = vmul.f32 %v1729_v5, %v307_v29  ;;  %v317_v57 = vpop.permute.xlu0 %316  ;;  %v1388_v29 = vld [vmem:[%s1954_s3 + $0x20] sm:$0xff]  }
  0xb5   : > { %v504_v30 = vpack.c.bf16 %v497_v28, %v496_v27  ;;  %v334_v12 = vmul.f32 %v1729_v5, %v317_v57  ;;  %v1386_v27 = vld [vmem:[%s1954_s3 + $0x10] sm:$0xff]   ;;  %v1387_v28 = vld [vmem:[%s1954_s3 + $0x18] sm:$0xff]  }
  0xb6   : > { %v384_v62 = vadd.f32 %v376_v50, %v332_v55 }
  0xb7   : > { %v312_v31 = vpop.permute.xlu1 %311  ;;  %1287 = vmatprep.subr.bf16.mxu0 %v504_v30 }
  0xb8   : > { %1288 = vmatpush3.bf16.msra.mxu0 %v504_v30  ;;  %v333_v63 = vmul.f32 %v1729_v5, %v312_v31  ;;  %v471_v56 = vpop.permute.xlu0 %470  ;;  %v1389_v30 = vld [vmem:[%s1954_s3 + $0x28] sm:$0xff]   ;;  %v1390_v31 = vld [vmem:[%s1954_s3 + $0x30] sm:$0xff]  }
  0xbc   : > { %v358_v32 = vpop.permute.xlu1 %357  ;;  %v486_v19 = vpop.permute.xlu0 %485 }
  0xbd   : > { %v377_v58 = vmul.f32 %v1727_v3, %v358_v32  ;;  %v1391_v32 = vld [vmem:[%s1954_s3 + $0x38] sm:$0xff]  }
  0xbf   : > { %v385_v2 = vadd.f32 %v377_v58, %v333_v63 }
  0xc0   : > { %v1826_v42 = vpop.permute.xlu0 %659 }
  0xc1   : > { %v406_v36 = vpop.permute.xlu1 %405  ;;  %v437_v16 = vadd.f32 %v429_v8, %v385_v2 }
  0xc2   : > { %v428_v59 = vmul.f32 %v1736_v11, %v406_v36  ;;  %v1395_v36 = vld [vmem:[%s1954_s3 + $0x58] sm:$0xff]  }
  0xc4   : > { %v436_v4 = vadd.f32 %v428_v59, %v384_v62 }
  0xc6   : > { %v461_v41 = vpop.permute.xlu1 %460  ;;  %v492_v13 = vadd.f32 %v471_v56, %v436_v4 }
  0xc7   : > { %v490_v44 = vadd.f32 %v461_v41, %v434_v43 }
  0xc8   : > { %v500_v21 = vmax.f32 %v492_v13, 0.0 }
  0xc9   : > { %v498_v48 = vmax.f32 %v490_v44, 0.0  ;;  %v580_v44 = vpop.permute.xlu0 %579 }
  0xca   : > { %v466_v46 = vpop.permute.xlu1 %465 }
  0xcb   : > { %v491_v47 = vadd.f32 %v466_v46, %v435_v45  ;;  %v1831_v45 = vld.sshfl [vmem:[%s1956_s5] sm:$0x33 pattern:$0x76325410] }
  0xcc   : > { %v1085_v46 = vcombine.high %v1831_v45, %v1831_v45 }
  0xcd   : > { %v499_v49 = vmax.f32 %v491_v47, 0.0 }
  0xce   : > { %v322_v51 = vpop.permute.xlu1 %321  ;;  %1120 = vmatprep.mubr.bf16.mxu1 %v1085_v46 }
  0xcf   : > { %v505_v53 = vpack.c.bf16 %v499_v49, %v498_v48  ;;  %v335_v0 = vmul.f32 %v1729_v5, %v322_v51  ;;  %v1837_v48 = vpop.permute.xlu0 %669 }
  0xd1   : > { %1289 = vmatprep.subr.bf16.mxu0 %v505_v53  ;;  %v387_v9 = vadd.f32 %v379_v1, %v335_v0 }
  0xd2   : > { %1290 = vmatpush3.bf16.msra.mxu0 %v505_v53 }
  0xd3   : > { %v362_v54 = vpop.permute.xlu1 %361  ;;  %v590_v51 = vpop.permute.xlu0 %589 }
  0xd4   : > { %v378_v10 = vmul.f32 %v1727_v3, %v362_v54 }
  0xd6   : > { %v386_v17 = vadd.f32 %v378_v10, %v334_v12 }
  0xd7   : > { %v1841_v54 = vpop.permute.xlu0 %679 }
  0xd8   : > { %v414_v61 = vpop.permute.xlu1 %413 }
  0xd9   : > { %v430_v14 = vmul.f32 %v1736_v11, %v414_v61 }
  0xdb   : > { %v438_v23 = vadd.f32 %v430_v14, %v386_v17  ;;  %v600_v55 = vpop.permute.xlu0 %599 }
  0xdc   : > { %v418_v6 = vpop.permute.xlu1 %417 }
  0xdd   : > { %v431_v7 = vmul.f32 %v1736_v11, %v418_v6  ;;  %v1385_v11 = vld [vmem:[%s1954_s3 + $0x8] sm:$0xff]  }
  0xdf   : > { %v439_v15 = vadd.f32 %v431_v7, %v387_v9  ;;  %v1845_v58 = vpop.permute.xlu0 %689 }
  0xe1   : > { %v476_v60 = vpop.permute.xlu1 %475  ;;  %v495_v20 = vadd.f32 %v486_v19, %v439_v15 }
  0xe2   : > { %v493_v18 = vadd.f32 %v476_v60, %v437_v16 }
  0xe3   : > { %v503_v3 = vmax.f32 %v495_v20, 0.0  ;;  %v610_v61 = vpop.permute.xlu0 %609 }
  0xe4   : > { %v501_v22 = vmax.f32 %v493_v18, 0.0 }
  0xe5   : > { %v481_v24 = vpop.permute.xlu1 %480 }
  0xe6   : > { %v506_v52 = vpack.c.bf16 %v501_v22, %v500_v21  ;;  %v494_v25 = vadd.f32 %v481_v24, %v438_v23 }
  0xe7   : > { %v1849_v63 = vpop.permute.xlu0 %699 }
  0xe8   : > { %v502_v26 = vmax.f32 %v494_v25, 0.0  ;;  %1291 = vmatprep.subr.bf16.mxu0 %v506_v52 }
  0xe9   : > { %1292 = vmatpush3.bf16.msra.mxu0 %v506_v52  ;;  %v1824_v41 = vpop.permute.xlu1 %654 }
  0xea   : > { %v507_v5 = vpack.c.bf16 %v503_v3, %v502_v26 }
  0xeb   : > { %v620_v1 = vpop.permute.xlu0 %619 }
  0xec   : > { %1293 = vmatprep.subr.bf16.mxu0 %v507_v5 }
  0xed   : > { %1294 = vmatpush3.bf16.msra.mxu0 %v507_v5  ;;  %v575_v43 = vpop.permute.xlu1 %574 }
  0xef   : > { %v1853_v4 = vpop.permute.xlu0 %709 }
  0xf0   : > { %1296 = vmatmul.mubr.msk.bf16.vlgmr.msra.gmra.mrb[0].mxu0 %vm812_vm0, %v1385_v11 }
  0xf1   : > { %1299 = vmatprep.mubr.msk.bf16.mxu0 %vm812_vm0, %v1386_v27  ;;  %v1835_v47 = vpop.permute.xlu1 %664 }
  0xf3   : > { %v630_v9 = vpop.permute.xlu0 %629 }
  0xf5   : > { %v585_v49 = vpop.permute.xlu1 %584 }
  0xf7   : > { %v1859_v21 = vpop.permute.xlu0 %719 }
  0xf8   : > { %1300 = vmatmul.mubr.msk.bf16.gmra.mrb[4].mxu0 %vm812_vm0, %v1387_v28 }
  0xf9   : > { %1303 = vmatprep.mubr.msk.bf16.mxu0 %vm812_vm0, %v1388_v29  ;;  %v1839_v53 = vpop.permute.xlu1 %674 }
  0xfd   : > { %v595_v50 = vpop.permute.xlu1 %594 }
 0x100   : > { %1304 = vmatmul.mubr.msk.bf16.gmra.mrb[8].mxu0 %vm812_vm0, %v1389_v30  ;;  %v640_v30 = vpop.permute.xlu0 %639 }
 0x101   : > { %1307 = vmatprep.mubr.msk.bf16.mxu0 %vm812_vm0, %v1390_v31  ;;  %v1843_v57 = vpop.permute.xlu1 %684 }
 0x104   : > { %v1869_v46 = vpop.permute.xlu0 %729 }
 0x105   : > { %v605_v59 = vpop.permute.xlu1 %604 }
 0x108   : > { %1308 = vmatmul.mubr.msk.bf16.gmra.mrb[12].mxu0 %vm812_vm0, %v1391_v32 }
 0x109   : > { %1311 = vmatprep.mubr.msk.bf16.mxu0 %vm812_vm0, %v1392_v33  ;;  %v1847_v62 = vpop.permute.xlu1 %694 }
 0x10d   : > { %v615_v0 = vpop.permute.xlu1 %614 }
 0x110   : > { %1312 = vmatmul.mubr.msk.bf16.gmra.mrb[16].mxu0 %vm812_vm0, %v1393_v34 }
 0x111   : > { %1315 = vmatprep.mubr.msk.bf16.mxu0 %vm812_vm0, %v1394_v35  ;;  %v1851_v2 = vpop.permute.xlu1 %704 }
 0x115   : > { %v625_v6 = vpop.permute.xlu1 %624 }
 0x118   : > { %1316 = vmatmul.mubr.msk.bf16.gmra.mrb[20].mxu0 %vm812_vm0, %v1395_v36 }
 0x119   : > { %1319 = vmatprep.mubr.msk.bf16.mxu0 %vm812_vm0, %v1396_v37  ;;  %v1855_v17 = vpop.permute.xlu1 %714 }
 0x11d   : > { %v635_v11 = vpop.permute.xlu1 %634 }
 0x120   : > { %1320 = vmatmul.mubr.msk.bf16.gmra.mrb[24].mxu0 %vm812_vm0, %v1397_v38 }
 0x121   : > { %1323 = vmatprep.mubr.msk.bf16.mxu0 %vm812_vm0, %v1398_v39  ;;  %v1867_v38 = vpop.permute.xlu1 %724 }
 0x128   : > { %1324 = vmatmul.mubr.msk.bf16.gmra.mrb[28].mxu0 %vm812_vm0, %v1399_v40 }
 0x1c3   : > { %v1297_v56 = vpop.f32.mrb[0].mxu0 }
 0x1c4   : > { %v904_v7 = vadd.f32 %v1297_v56, %v585_v49  ;;  %v895_v8 = vpop.f32.mrb[1].mxu0  ;;  %v645_v56 = vpop.permute.xlu1 %644 }
 0x1c5   : > { %v896_v10 = vadd.f32 %v895_v8, %v575_v43  ;;  %v1298_v12 = vpop.f32.mrb[2].mxu0 }
 0x1c6   : > { %v907_v13 = vadd.f32 %v1298_v12, %v590_v51  ;;  %v898_v14 = vpop.f32.mrb[3].mxu0  ;;  %v1024_v16 = vmax.f32 %v904_v7, 0.0  ;;  %v650_v12 = vpop.permute.xlu0 %649 }
 0x1c7   : > { %v899_v15 = vadd.f32 %v898_v14, %v580_v44  ;;  %v1022_v18 = vmax.f32 %v896_v10, 0.0 }
 0x1c8   : > { %v1025_v60 = vmax.f32 %v907_v13, 0.0 }
 0x1c9   : > { %v1023_v19 = vmax.f32 %v899_v15, 0.0 }
 0x1ca   : > { %v1857_v20 = vpack.c.bf16 %v1025_v60, %v1024_v16 }
 0x1cb   : > { %v1301_v22 = vpop.f32.mrb[4].mxu0  ;;  %v1861_v23 = vpack.c.bf16 %v1023_v19, %v1022_v18 }
 0x1cc   : > { %v920_v24 = vadd.f32 %v1301_v22, %v605_v59  ;;  %v911_v52 = vpop.f32.mrb[5].mxu0 }
 0x1cd   : > { %v912_v25 = vadd.f32 %v911_v52, %v595_v50  ;;  %v1302_v26 = vpop.f32.mrb[6].mxu0 }
 0x1ce   : > { %v923_v3 = vadd.f32 %v1302_v26, %v610_v61  ;;  %v914_v5 = vpop.f32.mrb[7].mxu0  ;;  %v1028_v28 = vmax.f32 %v920_v24, 0.0 }
 0x1cf   : > { %v915_v27 = vadd.f32 %v914_v5, %v600_v55  ;;  %v1026_v31 = vmax.f32 %v912_v25, 0.0 }
 0x1d0   : > { %v1029_v29 = vmax.f32 %v923_v3, 0.0 }
 0x1d1   : > { %v1027_v32 = vmax.f32 %v915_v27, 0.0 }
 0x1d2   : > { %v1863_v33 = vpack.c.bf16 %v1029_v29, %v1028_v28 }
 0x1d3   : > { %v1865_v34 = vpack.c.bf16 %v1027_v32, %v1026_v31  ;;  %v1305_v35 = vpop.f32.mrb[8].mxu0 }
 0x1d4   : > { %v936_v36 = vadd.f32 %v1305_v35, %v625_v6  ;;  %v927_v37 = vpop.f32.mrb[9].mxu0 }
 0x1d5   : > { %v928_v39 = vadd.f32 %v927_v37, %v615_v0  ;;  %v1306_v40 = vpop.f32.mrb[10].mxu0 }
 0x1d6   : > { %v939_v43 = vadd.f32 %v1306_v40, %v630_v9  ;;  %v930_v44 = vpop.f32.mrb[11].mxu0  ;;  %v1032_v51 = vmax.f32 %v936_v36, 0.0 }
 0x1d7   : > { %v931_v49 = vadd.f32 %v930_v44, %v620_v1  ;;  %v1030_v55 = vmax.f32 %v928_v39, 0.0 }
 0x1d8   : > { %v1033_v50 = vmax.f32 %v939_v43, 0.0 }
 0x1d9   : > { %v1031_v59 = vmax.f32 %v931_v49, 0.0 }
 0x1da   : > { %v1871_v61 = vpack.c.bf16 %v1033_v50, %v1032_v51 }
 0x1db   : > { %v1873_v7 = vpack.c.bf16 %v1031_v59, %v1030_v55  ;;  %v1309_v6 = vpop.f32.mrb[12].mxu0 }
 0x1dc   : > { %v952_v8 = vadd.f32 %v1309_v6, %v645_v56  ;;  %v943_v10 = vpop.f32.mrb[13].mxu0 }
 0x1dd   : > { %v944_v0 = vadd.f32 %v943_v10, %v635_v11  ;;  %v1310_v13 = vpop.f32.mrb[14].mxu0 }
 0x1de   : > { %v955_v9 = vadd.f32 %v1310_v13, %v650_v12  ;;  %v946_v14 = vpop.f32.mrb[15].mxu0  ;;  %v1036_v16 = vmax.f32 %v952_v8, 0.0 }
 0x1df   : > { %v947_v15 = vadd.f32 %v946_v14, %v640_v30  ;;  %v1034_v60 = vmax.f32 %v944_v0, 0.0 }
 0x1e0   : > { %v1037_v1 = vmax.f32 %v955_v9, 0.0 }
 0x1e1   : > { %v1035_v18 = vmax.f32 %v947_v15, 0.0 }
 0x1e2   : > { %v1875_v19 = vpack.c.bf16 %v1037_v1, %v1036_v16 }
 0x1e3   : > { %v1877_v22 = vpack.c.bf16 %v1035_v18, %v1034_v60  ;;  %v1313_v24 = vpop.f32.mrb[16].mxu0 }
 0x1e4   : > { %v968_v52 = vadd.f32 %v1313_v24, %v1835_v47  ;;  %v959_v25 = vpop.f32.mrb[17].mxu0 }
 0x1e5   : > { %v960_v26 = vadd.f32 %v959_v25, %v1824_v41  ;;  %v1314_v3 = vpop.f32.mrb[18].mxu0 }
 0x1e6   : > { %v971_v5 = vadd.f32 %v1314_v3, %v1837_v48  ;;  %v962_v11 = vpop.f32.mrb[19].mxu0  ;;  %v1040_v28 = vmax.f32 %v968_v52, 0.0 }
 0x1e7   : > { %v963_v27 = vadd.f32 %v962_v11, %v1826_v42  ;;  %v1038_v30 = vmax.f32 %v960_v26, 0.0 }
 0x1e8   : > { %v1041_v29 = vmax.f32 %v971_v5, 0.0 }
 0x1e9   : > { %v1039_v31 = vmax.f32 %v963_v27, 0.0 }
 0x1ea   : > { %v1063_v32 = vpack.c.bf16 %v1041_v29, %v1040_v28 }
 0x1eb   : > { %v1317_v35 = vpop.f32.mrb[20].mxu0  ;;  %v1062_v36 = vpack.c.bf16 %v1039_v31, %v1038_v30 }
 0x1ec   : > { %v984_v37 = vadd.f32 %v1317_v35, %v1843_v57  ;;  %v975_v39 = vpop.f32.mrb[21].mxu0 }
 0x1ed   : > { %v976_v47 = vadd.f32 %v975_v39, %v1839_v53  ;;  %v1318_v40 = vpop.f32.mrb[22].mxu0  ;;  %1265 = vmatprep.subr.bf16.mxu1 %v1062_v36 }
 0x1ee   : > { %v987_v41 = vadd.f32 %v1318_v40, %v1845_v58  ;;  %v978_v48 = vpop.f32.mrb[23].mxu0  ;;  %1266 = vmatpush3.bf16.msra.mxu1 %v1861_v23  ;;  %v1044_v43 = vmax.f32 %v984_v37, 0.0 }
 0x1ef   : > { %v979_v42 = vadd.f32 %v978_v48, %v1841_v54  ;;  %1267 = vmatprep.subr.bf16.mxu1 %v1063_v32  ;;  %v1042_v49 = vmax.f32 %v976_v47, 0.0 }
 0x1f0   : > { %v1045_v44 = vmax.f32 %v987_v41, 0.0 }
 0x1f1   : > { %v1043_v51 = vmax.f32 %v979_v42, 0.0 }
 0x1f2   : > { %v1065_v50 = vpack.c.bf16 %v1045_v44, %v1044_v43  ;;  %1268 = vmatpush3.bf16.msra.mxu1 %v1857_v20 }
 0x1f3   : > { %v1064_v57 = vpack.c.bf16 %v1043_v51, %v1042_v49  ;;  %v1321_v55 = vpop.f32.mrb[24].mxu0 }
 0x1f4   : > { %v1000_v53 = vadd.f32 %v1321_v55, %v1851_v2  ;;  %v991_v59 = vpop.f32.mrb[25].mxu0 }
 0x1f5   : > { %v992_v58 = vadd.f32 %v991_v59, %v1847_v62  ;;  %v1322_v56 = vpop.f32.mrb[26].mxu0  ;;  %1269 = vmatprep.subr.bf16.mxu1 %v1064_v57 }
 0x1f6   : > { %v1003_v23 = vadd.f32 %v1322_v56, %v1853_v4  ;;  %v994_v54 = vpop.f32.mrb[27].mxu0  ;;  %1270 = vmatpush3.bf16.msra.mxu1 %v1865_v34  ;;  %v1048_v8 = vmax.f32 %v1000_v53, 0.0 }
 0x1f7   : > { %v995_v6 = vadd.f32 %v994_v54, %v1849_v63  ;;  %1271 = vmatprep.subr.bf16.mxu1 %v1065_v50  ;;  %v1046_v20 = vmax.f32 %v992_v58, 0.0 }
 0x1f8   : > { %v1049_v10 = vmax.f32 %v1003_v23, 0.0 }
 0x1f9   : > { %v1047_v12 = vmax.f32 %v995_v6, 0.0 }
 0x1fa   : > { %v1067_v0 = vpack.c.bf16 %v1049_v10, %v1048_v8  ;;  %1272 = vmatpush3.bf16.msra.mxu1 %v1863_v33 }
 0x1fb   : > { %v1066_v2 = vpack.c.bf16 %v1047_v12, %v1046_v20  ;;  %v1325_v13 = vpop.f32.mrb[28].mxu0 }
 0x1fc   : > { %v1016_v62 = vadd.f32 %v1325_v13, %v1867_v38  ;;  %v1007_v9 = vpop.f32.mrb[29].mxu0 }
 0x1fd   : > { %v1008_v4 = vadd.f32 %v1007_v9, %v1855_v17  ;;  %v1326_v14 = vpop.f32.mrb[30].mxu0  ;;  %1273 = vmatprep.subr.bf16.mxu1 %v1066_v2 }
 0x1fe   : > { %v1019_v34 = vadd.f32 %v1326_v14, %v1869_v46  ;;  %v1010_v63 = vpop.f32.mrb[31].mxu0  ;;  %1274 = vmatpush3.bf16.msra.mxu1 %v1873_v7  ;;  %v1052_v16 = vmax.f32 %v1016_v62, 0.0 }
 0x1ff   : > { %v1011_v15 = vadd.f32 %v1010_v63, %v1859_v21  ;;  %1275 = vmatprep.subr.bf16.mxu1 %v1067_v0  ;;  %v1050_v1 = vmax.f32 %v1008_v4, 0.0 }
 0x200   : > { %v1053_v33 = vmax.f32 %v1019_v34, 0.0 }
 0x201   : > { %v1051_v60 = vmax.f32 %v1011_v15, 0.0 }
 0x202   : > { %v1069_v38 = vpack.c.bf16 %v1053_v33, %v1052_v16  ;;  %1276 = vmatpush3.bf16.msra.mxu1 %v1871_v61  ;;  %v1075_v61 = vpop.permute.xlu1 %1074 }
 0x203   : > { %v1068_v17 = vpack.c.bf16 %v1051_v60, %v1050_v1 }
 0x205   : > { %1277 = vmatprep.subr.bf16.mxu1 %v1068_v17 }
 0x206   : > { %1278 = vmatpush3.bf16.msra.mxu1 %v1877_v22 }
 0x207   : > { %1279 = vmatprep.subr.bf16.mxu1 %v1069_v38 }
 0x20a   : > { %1280 = vmatpush3.bf16.msra.mxu1 %v1875_v19 }
 0x20d   : > { %1121 = vmatmul.mubr.bf16.vlgmr.msra.gmra.mrb[0].mxu1 %v1831_v45 }
 0x2e0   : > { %v1281_v21 = vpop.f32.mrb[0].mxu1 }
 0x2e1   : > { %v1282_v46 = vpop.f32.mrb[1].mxu1 }
 0x2e2   : > { %v1283_v7 = vadd.f32 %v1282_v46, %v1281_v21  ;;  %v1284_v18 = vpop.f32.mrb[2].mxu1 }
 0x2e3   : > { %v1285_v24 = vpop.f32.mrb[3].mxu1 }
 0x2e4   : > { %v1123_v52 = vadd.f32 %v1283_v7, %v1075_v61 }
 0x2e6   : > { %1128 = vst [vmem:[%s269_s13] sm:$0xf] %v1123_v52 }
 0x2e7   : > { %1413 = shalt.err (!%p1410_p3)
}
 0x2e8   : > { %s1414_s22 = scalar_lea.hbm %s1909_s17, 64  ;;  %s1418_s8 = scalar_lea.hbm %s1958_s7, 128 }
 0x2e9   : > { %p1415_p4 = scmp.ne.s32.totalorder %s1909_s17, %s1414_s22  ;;  %p1419_p9 = scmp.lt.u32.totalorder %s1909_s17, %s1958_s7 }
 0x2ea   : > { %p1420_p10 = scmp.lt.u32.totalorder %s1418_s8, %s1414_s22  ;;  %p1422_p12 = scmp.lt.u32.totalorder %s1414_s22, %s1909_s17 }
 0x2eb   : > { %p1416_p7 = pnand %p1415_p4, %p1546_p5 }
 0x2ec   : > { %p1421_p11 = por %p1420_p10, %p1419_p9 }
 0x2ed   : > { %p1417_p8 = pneg %p1416_p7 }
 0x2ee   : > { %p1423_p13 = por %p1422_p12, %p1421_p11 }
 0x2f0   : > { %p1424_p0 = pnand %p1423_p13, %p1417_p8 }
 0x2f2   : > { %1427 = shalt.err (!%p1424_p0)
}
 0x2f3   : > { %1327 = dma.vmem_to_hbm [thread:$0]  (%p1546_p5), %s1911_s14, 64, %s1909_s17, %s1130_s18  }
 0x2f4 PF: > { %p1333_p1 = scmp.ge.s32.totalorder %s1462_s27, 2  ;;  %s1155_s15 = sand.u32 1, %s1450_s24  }
 0x2f5   : > { %s1156_s16 = scalar_lea.sflag [#allocation3], %s1155_s15 }
 0x2f6   : > { %p1330_p2 = pnand %p1333_p1, %p1550_p6 }
 0x2f8   : > { %1445 = dma.done.wait (!%p1330_p2), %s1156_s16, 64  }
 0x2f9   : > { %1447 = vsyncadd (!%p1330_p2), %s1156_s16, 4294967232  ;;  %p17_p3 = scmp.ge.s32.totalorder %s1533_s30, 4   ;;  %s1961_s24 = smov %s1454_s25 }
 0x2fa   : > { %s1962_s25 = smov %s1458_s26  ;;  %s1963_s26 = smov %s1544_s10 }
 0x2fb   : > { %s1964_s27 = smov %s1533_s30  ;;  %19 = sbr.rel (!%p17_p3) target bundleno = 3 (0x3), region = 83 }
 0x302   :  { %1161 = vsyncpa [#allocation3], 1 }
 0x303   :  { %1163 = vsyncpa [#allocation3 + $0x1], 1 }

</bundles_post_ra>
